<compile_context>
chip_gen: v6e
topology: v6e:2x2x1
jax: 0.10.0
libtpu: 0.0.40
codegen_flags: <defaults>
</compile_context>

<pallas_src>
import functools

import numpy as np
import jax
import jax.numpy as jnp
from jax.experimental import pallas as pl
from jax.experimental.pallas import tpu as pltpu


def _round_up(x, m):
    return ((x + m - 1) // m) * m


def _make_kernel(h, w, hw_tile):
    sx = 2.0 / (w - 1)
    sy = 2.0 / (h - 1)

    def kernel(proj_ref, coords_ref, feats_ref,
               fsum_ref, cnt_ref, imx_ref, imy_ref, msk_ref):
        v = pl.program_id(1)          # view (reduction axis for fsum / cnt)
        k = pl.program_id(2)          # H*W chunk (reduction axis for fsum)

        @pl.when(jnp.logical_and(v == 0, k == 0))
        def _():
            fsum_ref[...] = jnp.zeros_like(fsum_ref)
            cnt_ref[...] = jnp.zeros_like(cnt_ref)

        # ---- projection: scalar-broadcast FMAs on the VPU, proj in SMEM ----
        xw = coords_ref[0:1, :]       # (1, nv_tile) world coords, lane-dense
        yw = coords_ref[1:2, :]
        zw = coords_ref[2:3, :]

        base = v * 16

        def p(r, c):                  # scalar load from SMEM
            return proj_ref[base + 4 * r + c]

        im_x = xw * p(0, 0) + yw * p(0, 1) + zw * p(0, 2) + p(0, 3)
        im_y = xw * p(1, 0) + yw * p(1, 1) + zw * p(1, 2) + p(1, 3)
        im_z = xw * p(2, 0) + yw * p(2, 1) + zw * p(2, 2) + p(2, 3)

        inv_z = pl.reciprocal(im_z)   # one EUP divide instead of two
        px = im_x * inv_z             # pixel coords (align_corners=True)
        py = im_y * inv_z
        gx = px * sx - 1.0            # normalized grid coords
        gy = py * sy - 1.0

        mask = (jnp.abs(gx) <= 1.0) & (jnp.abs(gy) <= 1.0) & (im_z > 0.0)
        mask_f = mask.astype(jnp.float32)               # (1, nv_tile)

        # ---- bilinear weights (grid_sample, padding_mode='zeros') ----------
        x0 = jnp.floor(px)
        y0 = jnp.floor(py)
        wx1 = px - x0
        wx0 = 1.0 - wx1
        wy1 = py - y0
        wy0 = 1.0 - wy1

        def corner_w(xf, yf, wgt):
            inb = (xf >= 0.0) & (xf <= w - 1.0) & (yf >= 0.0) & (yf <= h - 1.0)
            # zeroes: out-of-image corners, per-view-masked voxels, NaN/inf
            # rows (NaN comparisons are False, where() discards the NaN arm).
            return jnp.where(inb, wgt * mask_f, 0.0)    # (1, nv_tile)

        w00 = corner_w(x0, y0, wx0 * wy0)
        w10 = corner_w(x0 + 1.0, y0, wx1 * wy0)
        w01 = corner_w(x0, y0 + 1.0, wx0 * wy1)
        w11 = corner_w(x0 + 1.0, y0 + 1.0, wx1 * wy1)

        # flat index of corner (x0, y0) relative to this HW chunk
        rel = (y0 * w + x0).astype(jnp.int32) - k * hw_tile   # (1, nv_tile)

        nv_tile = coords_ref.shape[1]
        lane = jax.lax.broadcasted_iota(jnp.int32, (hw_tile, nv_tile), 0)

        # One-hot scatter of the 4 corner weights.  The 4 corner lanes of a
        # voxel (rel, rel+1, rel+w, rel+w+1) are pairwise distinct for w >= 2,
        # so chained selects are exact and save the 3 adds + bf16 cast of the
        # add-based formulation (hot-loop cost: 4 cmp + 4 sel per element).
        wm = jnp.where(lane == rel, w00, 0.0)
        wm = jnp.where(lane == rel + 1, w10, wm)
        wm = jnp.where(lane == rel + w, w01, wm)
        wm = jnp.where(lane == rel + (w + 1), w11, wm)

        # (c_pad, hw_tile) @ (hw_tile, nv_tile) -> (c_pad, nv_tile) on the MXU
        # in f32 (kernel is select-bound, MXU has slack; matches torch f32).
        # Masked voxels already have zero weights, so accumulate straight in.
        fsum_ref[...] += jnp.dot(feats_ref[0], wm,
                                 preferred_element_type=jnp.float32)

        @pl.when(k == 0)              # per-(voxel-tile, view) scalars: once
        def _():
            cnt_ref[...] += mask_f
            imx_ref[...] = gx[None]
            imy_ref[...] = gy[None]
            msk_ref[...] = mask_f[None]

    return kernel


@functools.partial(jax.jit, static_argnames=("h", "w", "hw_tile", "nv_tile"))
def _project_batch(coords_pad, proj_flat, feats_b, h, w, hw_tile, nv_tile):
    """Pallas projection + masked bilinear gather for one batch.

    coords_pad : (8, nv_pad) f32   rows 0..2 = world x/y/z, voxel on lanes
    proj_flat  : (n_views*16,) f32 row-major per-view 4x4 projection matrices
    feats_b    : (n_views, C, H, W) image features for this batch
    Returns fsum (c_pad, nv_pad), cnt (1, nv_pad), imx/imy/msk (n_views,1,nv_pad)
    """
    n_views, c = feats_b.shape[0], feats_b.shape[1]
    hw = h * w
    c_pad = _round_up(max(c, 8), 8)
    hw_pad = _round_up(hw, hw_tile)
    nv_pad = coords_pad.shape[1]

    feats_flat = feats_b.reshape(n_views, c, hw).astype(jnp.float32)
    if c_pad == c and hw_pad == hw:
        feats_pad = feats_flat
    else:
        feats_pad = jnp.zeros((n_views, c_pad, hw_pad), jnp.float32)
        feats_pad = feats_pad.at[:, :c, :hw].set(feats_flat)

    kernel = _make_kernel(h, w, hw_tile)
    grid = (nv_pad // nv_tile, n_views, hw_pad // hw_tile)

    out_shapes = (
        jax.ShapeDtypeStruct((c_pad, nv_pad), jnp.float32),        # fsum
        jax.ShapeDtypeStruct((1, nv_pad), jnp.float32),            # count
        jax.ShapeDtypeStruct((n_views, 1, nv_pad), jnp.float32),   # im_grid x
        jax.ShapeDtypeStruct((n_views, 1, nv_pad), jnp.float32),   # im_grid y
        jax.ShapeDtypeStruct((n_views, 1, nv_pad), jnp.float32),   # mask
    )
    in_specs = [
        pl.BlockSpec(memory_space=pltpu.MemorySpace.SMEM),             # proj
        pl.BlockSpec((8, nv_tile), lambda i, v, k: (0, i)),            # coords
        pl.BlockSpec((1, c_pad, hw_tile), lambda i, v, k: (v, 0, k)),  # feats
    ]
    out_specs = (
        pl.BlockSpec((c_pad, nv_tile), lambda i, v, k: (0, i)),
        pl.BlockSpec((1, nv_tile), lambda i, v, k: (0, i)),
        pl.BlockSpec((1, 1, nv_tile), lambda i, v, k: (v, 0, i)),
        pl.BlockSpec((1, 1, nv_tile), lambda i, v, k: (v, 0, i)),
        pl.BlockSpec((1, 1, nv_tile), lambda i, v, k: (v, 0, i)),
    )

    return pl.pallas_call(
        kernel,
        out_shape=out_shapes,
        grid=grid,
        in_specs=in_specs,
        out_specs=out_specs,
        compiler_params=pltpu.CompilerParams(
            dimension_semantics=("parallel", "arbitrary", "arbitrary")),
    )(proj_flat, coords_pad, feats_pad)


def back_project(coords, origin, voxel_size, feats, KRcam, min_view_number,
                 nv_tile=256, hw_tile=2048):
    """JAX/Pallas reimplementation of Back_Project.forward."""
    n_views, bs, c, h, w = feats.shape
    N = coords.shape[0]
    hw = h * w

    nv_tile = _round_up(nv_tile, 128)
    hw_tile = min(_round_up(hw_tile, 128), _round_up(hw, 128))

    coords_np = np.asarray(coords)         # one host copy of the voxel ids
    count = np.zeros((N,), np.float32)

    occ_feat_list, coord_list, im_grid_list, mask_list = [], [], [], []

    # TODO(synk): the per-batch loop + valid-voxel compaction produce
    # data-dependent output shapes (and an early `return None`), so they stay
    # host-side; only the projection/sampling hot path runs in Pallas.
    for batch in range(bs):
        batch_ind = np.nonzero(coords_np[:, 0] == batch)[0]
        nV = int(batch_ind.shape[0])
        if nV == 0:
            return None

        nv_pad = _round_up(nV, nv_tile)    # bucketed -> stable jit cache key

        coords_b = coords[batch_ind]                                # (nV, 4)
        grid_world = (coords_b[:, 1:].astype(jnp.float32) * voxel_size
                      + origin[batch].astype(jnp.float32)[None, :])  # (nV, 3)

        coords_pad = jnp.zeros((8, nv_pad), jnp.float32)
        coords_pad = coords_pad.at[:3, :nV].set(grid_world.T)   # lane-dense

        proj_flat = KRcam[:, batch].astype(jnp.float32).reshape(-1)

        fsum, cnt, imx, imy, msk = _project_batch(
            coords_pad, proj_flat, feats[:, batch],
            h=h, w=w, hw_tile=hw_tile, nv_tile=nv_tile)

        cnt_b = np.asarray(cnt[0, :nV])    # host sync: data-dependent shapes
        count[batch_ind] = cnt_b

        valid_idx = np.nonzero(cnt_b >= min_view_number)[0]
        if valid_idx.size == 0:
            return None

        im_grid = jnp.stack([imx[:, 0, :nV][:, valid_idx],
                             imy[:, 0, :nV][:, valid_idx]], axis=-1)
        mask_b = msk[:, 0, :nV][:, valid_idx] > 0.5

        denom = jnp.maximum(jnp.asarray(cnt_b[valid_idx]), 1.0)
        features = (fsum[:c, :nV][:, valid_idx] / denom[None, :]).T  # (nv, C)

        occ_feat_list.append(features)
        coord_list.append(coords_b[valid_idx])
        im_grid_list.append(im_grid)
        mask_list.append(mask_b)

    occ_feat_init = jnp.concatenate(occ_feat_list, axis=0)
    coord_init = jnp.concatenate(coord_list, axis=0)
    im_grid_all = jnp.concatenate(im_grid_list, axis=1)
    mask_all = jnp.concatenate(mask_list, axis=1)
    return [occ_feat_init, coord_init, im_grid_all, mask_all,
            jnp.asarray(count)]


if __name__ == "__main__":
    key = jax.random.PRNGKey(0)
    n_views, bs, c, h, w = 3, 2, 4, 16, 16
    num_voxels = 200
    voxel_size = 0.1
    min_view_number = 2

    k1, k2, k3, k4 = jax.random.split(key, 4)
    batch_idx = jax.random.randint(k1, (num_voxels, 1), 0, bs)
    xyz = jax.random.randint(k2, (num_voxels, 3), 0, 20)
    coords = jnp.concatenate([batch_idx, xyz], axis=1).astype(jnp.int32)
    origin = (jax.random.normal(k3, (bs, 3), jnp.float32) * 0.05)
    feats = jax.random.normal(k4, (n_views, bs, c, h, w), jnp.float32)

    # simple synthetic pinhole cameras looking down +z, slight per-view shift
    fx = fy = 7.0
    cx = (w - 1) / 2.0
    cy = (h - 1) / 2.0
    KR = np.zeros((n_views, bs, 4, 4), np.float32)
    for v in range(n_views):
        for b in range(bs):
            tz = 2.0 + 0.1 * v + 0.05 * b
            dx = 1.5 * (v - 1)
            dy = 1.0 * (v - 1)
            KR[v, b] = np.array(
                [[fx, 0.0, cx, cx * tz + dx],
                 [0.0, fy, cy, cy * tz + dy],
                 [0.0, 0.0, 1.0, tz],
                 [0.0, 0.0, 0.0, 1.0]], np.float32)
    KRcam = jnp.asarray(KR)

    out = back_project(coords, origin, voxel_size, feats, KRcam,
                       min_view_number)
    assert out is not None, "no valid voxels found"
    occ_feat_init, coord_init, im_grid_all, mask_all, count = out
    jax.block_until_ready(occ_feat_init)
    jax.block_until_ready(coord_init)
    jax.block_until_ready(im_grid_all)
    jax.block_until_ready(mask_all)
    jax.block_until_ready(count)

    assert occ_feat_init.shape[1] == c
    assert coord_init.shape[0] == occ_feat_init.shape[0]
    assert im_grid_all.shape == (n_views, occ_feat_init.shape[0], 2)
    assert mask_all.shape == (n_views, occ_feat_init.shape[0])
    assert count.shape == (num_voxels,)
    assert bool(jnp.all(jnp.isfinite(occ_feat_init)))
    assert bool(jnp.all((count >= 0) & (count <= n_views)))

    print("KERNEL_OK")
</pallas_src>

<mosaic_0001>
module attributes {stable_mosaic.version = 11 : i64} {
  func.func @kernel(%arg0: i32, %arg1: i32, %arg2: i32, %arg3: memref<48xf32, #tpu.memory_space<smem>>, %arg4: memref<8x256xf32, #tpu.memory_space<vmem>>, %arg5: memref<1x8x256xf32, #tpu.memory_space<vmem>>, %arg6: memref<8x256xf32, #tpu.memory_space<vmem>>, %arg7: memref<1x256xf32, #tpu.memory_space<vmem>>, %arg8: memref<1x1x256xf32, #tpu.memory_space<vmem>>, %arg9: memref<1x1x256xf32, #tpu.memory_space<vmem>>, %arg10: memref<1x1x256xf32, #tpu.memory_space<vmem>>) attributes {dimension_semantics = [#tpu.dimension_semantics<parallel>, #tpu.dimension_semantics<arbitrary>, #tpu.dimension_semantics<arbitrary>], iteration_bounds = array<i64: 1, 3, 1>, scalar_prefetch = 0 : i64, scratch_operands = 0 : i64, tpu.core_type = #tpu.core_type<tc>, window_params = [{transform_indices = @transform_0, window_bounds = array<i64: 48>}, {transform_indices = @transform_1, window_bounds = array<i64: 8, 256>}, {transform_indices = @transform_2, window_bounds = array<i64: 1, 8, 256>}, {transform_indices = @transform_3, window_bounds = array<i64: 8, 256>}, {transform_indices = @transform_4, window_bounds = array<i64: 1, 256>}, {transform_indices = @transform_5, window_bounds = array<i64: 1, 1, 256>}, {transform_indices = @transform_6, window_bounds = array<i64: 1, 1, 256>}, {transform_indices = @transform_7, window_bounds = array<i64: 1, 1, 256>}]} {
    %c0_i32 = arith.constant 0 : i32
    %0 = arith.cmpi eq, %arg1, %c0_i32 : i32
    %c0_i32_0 = arith.constant 0 : i32
    %1 = arith.cmpi eq, %arg2, %c0_i32_0 : i32
    %2 = arith.andi %0, %1 : i1
    %3 = arith.extui %2 : i1 to i32
    %c0_i32_1 = arith.constant 0 : i32
    %4 = arith.cmpi ne, %3, %c0_i32_1 : i32
    scf.if %4 {
      %cst_70 = arith.constant 0.000000e+00 : f32
      %230 = vector.broadcast %cst_70 : f32 to vector<8x256xf32>
      %c0_71 = arith.constant 0 : index
      %c0_72 = arith.constant 0 : index
      %231 = vector.load %arg6[%c0_71, %c0_72] : memref<8x256xf32, #tpu.memory_space<vmem>>, vector<8x256xf32>
      tpu.vector_store %arg6[%c0_71, %c0_72], %230 {strides = array<i32>} : memref<8x256xf32, #tpu.memory_space<vmem>>, vector<8x256xf32>,
      %cst_73 = arith.constant 0.000000e+00 : f32
      %232 = vector.broadcast %cst_73 : f32 to vector<1x256xf32>
      %c0_74 = arith.constant 0 : index
      %c0_75 = arith.constant 0 : index
      %233 = vector.load %arg7[%c0_74, %c0_75] : memref<1x256xf32, #tpu.memory_space<vmem>>, vector<1x256xf32>
      tpu.vector_store %arg7[%c0_74, %c0_75], %232 {strides = array<i32>} : memref<1x256xf32, #tpu.memory_space<vmem>>, vector<1x256xf32>,
    } else {
    }
    %c0 = arith.constant 0 : index
    %c0_2 = arith.constant 0 : index
    %5 = vector.load %arg4[%c0, %c0_2] : memref<8x256xf32, #tpu.memory_space<vmem>>, vector<1x256xf32>
    %c1 = arith.constant 1 : index
    %c0_3 = arith.constant 0 : index
    %6 = vector.load %arg4[%c1, %c0_3] : memref<8x256xf32, #tpu.memory_space<vmem>>, vector<1x256xf32>
    %c2 = arith.constant 2 : index
    %c0_4 = arith.constant 0 : index
    %7 = vector.load %arg4[%c2, %c0_4] : memref<8x256xf32, #tpu.memory_space<vmem>>, vector<1x256xf32>
    %c16_i32 = arith.constant 16 : i32
    %8 = arith.muli %arg1, %c16_i32 : i32
    %c0_i32_5 = arith.constant 0 : i32
    %9 = arith.addi %8, %c0_i32_5 : i32
    %c0_i32_6 = arith.constant 0 : i32
    %10 = arith.addi %9, %c0_i32_6 : i32
    %11 = arith.index_cast %10 : i32 to index
    %12 = memref.load %arg3[%11] : memref<48xf32, #tpu.memory_space<smem>>
    %13 = vector.broadcast %12 : f32 to vector<1x256xf32>
    %14 = arith.mulf %5, %13 : vector<1x256xf32>
    %c0_i32_7 = arith.constant 0 : i32
    %15 = arith.addi %8, %c0_i32_7 : i32
    %c1_i32 = arith.constant 1 : i32
    %16 = arith.addi %15, %c1_i32 : i32
    %17 = arith.index_cast %16 : i32 to index
    %18 = memref.load %arg3[%17] : memref<48xf32, #tpu.memory_space<smem>>
    %19 = vector.broadcast %18 : f32 to vector<1x256xf32>
    %20 = arith.mulf %6, %19 : vector<1x256xf32>
    %21 = arith.addf %14, %20 : vector<1x256xf32>
    %c0_i32_8 = arith.constant 0 : i32
    %22 = arith.addi %8, %c0_i32_8 : i32
    %c2_i32 = arith.constant 2 : i32
    %23 = arith.addi %22, %c2_i32 : i32
    %24 = arith.index_cast %23 : i32 to index
    %25 = memref.load %arg3[%24] : memref<48xf32, #tpu.memory_space<smem>>
    %26 = vector.broadcast %25 : f32 to vector<1x256xf32>
    %27 = arith.mulf %7, %26 : vector<1x256xf32>
    %28 = arith.addf %21, %27 : vector<1x256xf32>
    %c0_i32_9 = arith.constant 0 : i32
    %29 = arith.addi %8, %c0_i32_9 : i32
    %c3_i32 = arith.constant 3 : i32
    %30 = arith.addi %29, %c3_i32 : i32
    %31 = arith.index_cast %30 : i32 to index
    %32 = memref.load %arg3[%31] : memref<48xf32, #tpu.memory_space<smem>>
    %33 = vector.broadcast %32 : f32 to vector<1x256xf32>
    %34 = arith.addf %28, %33 : vector<1x256xf32>
    %c4_i32 = arith.constant 4 : i32
    %35 = arith.addi %8, %c4_i32 : i32
    %c0_i32_10 = arith.constant 0 : i32
    %36 = arith.addi %35, %c0_i32_10 : i32
    %37 = arith.index_cast %36 : i32 to index
    %38 = memref.load %arg3[%37] : memref<48xf32, #tpu.memory_space<smem>>
    %39 = vector.broadcast %38 : f32 to vector<1x256xf32>
    %40 = arith.mulf %5, %39 : vector<1x256xf32>
    %c4_i32_11 = arith.constant 4 : i32
    %41 = arith.addi %8, %c4_i32_11 : i32
    %c1_i32_12 = arith.constant 1 : i32
    %42 = arith.addi %41, %c1_i32_12 : i32
    %43 = arith.index_cast %42 : i32 to index
    %44 = memref.load %arg3[%43] : memref<48xf32, #tpu.memory_space<smem>>
    %45 = vector.broadcast %44 : f32 to vector<1x256xf32>
    %46 = arith.mulf %6, %45 : vector<1x256xf32>
    %47 = arith.addf %40, %46 : vector<1x256xf32>
    %c4_i32_13 = arith.constant 4 : i32
    %48 = arith.addi %8, %c4_i32_13 : i32
    %c2_i32_14 = arith.constant 2 : i32
    %49 = arith.addi %48, %c2_i32_14 : i32
    %50 = arith.index_cast %49 : i32 to index
    %51 = memref.load %arg3[%50] : memref<48xf32, #tpu.memory_space<smem>>
    %52 = vector.broadcast %51 : f32 to vector<1x256xf32>
    %53 = arith.mulf %7, %52 : vector<1x256xf32>
    %54 = arith.addf %47, %53 : vector<1x256xf32>
    %c4_i32_15 = arith.constant 4 : i32
    %55 = arith.addi %8, %c4_i32_15 : i32
    %c3_i32_16 = arith.constant 3 : i32
    %56 = arith.addi %55, %c3_i32_16 : i32
    %57 = arith.index_cast %56 : i32 to index
    %58 = memref.load %arg3[%57] : memref<48xf32, #tpu.memory_space<smem>>
    %59 = vector.broadcast %58 : f32 to vector<1x256xf32>
    %60 = arith.addf %54, %59 : vector<1x256xf32>
    %c8_i32 = arith.constant 8 : i32
    %61 = arith.addi %8, %c8_i32 : i32
    %c0_i32_17 = arith.constant 0 : i32
    %62 = arith.addi %61, %c0_i32_17 : i32
    %63 = arith.index_cast %62 : i32 to index
    %64 = memref.load %arg3[%63] : memref<48xf32, #tpu.memory_space<smem>>
    %65 = vector.broadcast %64 : f32 to vector<1x256xf32>
    %66 = arith.mulf %5, %65 : vector<1x256xf32>
    %c8_i32_18 = arith.constant 8 : i32
    %67 = arith.addi %8, %c8_i32_18 : i32
    %c1_i32_19 = arith.constant 1 : i32
    %68 = arith.addi %67, %c1_i32_19 : i32
    %69 = arith.index_cast %68 : i32 to index
    %70 = memref.load %arg3[%69] : memref<48xf32, #tpu.memory_space<smem>>
    %71 = vector.broadcast %70 : f32 to vector<1x256xf32>
    %72 = arith.mulf %6, %71 : vector<1x256xf32>
    %73 = arith.addf %66, %72 : vector<1x256xf32>
    %c8_i32_20 = arith.constant 8 : i32
    %74 = arith.addi %8, %c8_i32_20 : i32
    %c2_i32_21 = arith.constant 2 : i32
    %75 = arith.addi %74, %c2_i32_21 : i32
    %76 = arith.index_cast %75 : i32 to index
    %77 = memref.load %arg3[%76] : memref<48xf32, #tpu.memory_space<smem>>
    %78 = vector.broadcast %77 : f32 to vector<1x256xf32>
    %79 = arith.mulf %7, %78 : vector<1x256xf32>
    %80 = arith.addf %73, %79 : vector<1x256xf32>
    %c8_i32_22 = arith.constant 8 : i32
    %81 = arith.addi %8, %c8_i32_22 : i32
    %c3_i32_23 = arith.constant 3 : i32
    %82 = arith.addi %81, %c3_i32_23 : i32
    %83 = arith.index_cast %82 : i32 to index
    %84 = memref.load %arg3[%83] : memref<48xf32, #tpu.memory_space<smem>>
    %85 = vector.broadcast %84 : f32 to vector<1x256xf32>
    %86 = arith.addf %80, %85 : vector<1x256xf32>
    %87 = tpu.reciprocal %86 : vector<1x256xf32> -> vector<1x256xf32>
    %88 = arith.mulf %34, %87 : vector<1x256xf32>
    %89 = arith.mulf %60, %87 : vector<1x256xf32>
    %cst = arith.constant 0.13333334 : f32
    %90 = vector.broadcast %cst : f32 to vector<1x256xf32>
    %91 = arith.mulf %88, %90 : vector<1x256xf32>
    %cst_24 = arith.constant 1.000000e+00 : f32
    %92 = vector.broadcast %cst_24 : f32 to vector<1x256xf32>
    %93 = arith.subf %91, %92 : vector<1x256xf32>
    %cst_25 = arith.constant 0.13333334 : f32
    %94 = vector.broadcast %cst_25 : f32 to vector<1x256xf32>
    %95 = arith.mulf %89, %94 : vector<1x256xf32>
    %cst_26 = arith.constant 1.000000e+00 : f32
    %96 = vector.broadcast %cst_26 : f32 to vector<1x256xf32>
    %97 = arith.subf %95, %96 : vector<1x256xf32>
    %98 = math.absf %93 : vector<1x256xf32>
    %cst_27 = arith.constant 1.000000e+00 : f32
    %99 = vector.broadcast %cst_27 : f32 to vector<1x256xf32>
    %100 = arith.cmpf ole, %98, %99 : vector<1x256xf32>
    %101 = math.absf %97 : vector<1x256xf32>
    %cst_28 = arith.constant 1.000000e+00 : f32
    %102 = vector.broadcast %cst_28 : f32 to vector<1x256xf32>
    %103 = arith.cmpf ole, %101, %102 : vector<1x256xf32>
    %104 = arith.andi %100, %103 : vector<1x256xi1>
    %cst_29 = arith.constant 0.000000e+00 : f32
    %105 = vector.broadcast %cst_29 : f32 to vector<1x256xf32>
    %106 = arith.cmpf ogt, %86, %105 : vector<1x256xf32>
    %107 = arith.andi %104, %106 : vector<1x256xi1>
    %108 = arith.extui %107 : vector<1x256xi1> to vector<1x256xi32>
    %109 = arith.sitofp %108 : vector<1x256xi32> to vector<1x256xf32>
    %110 = math.floor %88 : vector<1x256xf32>
    %111 = math.floor %89 : vector<1x256xf32>
    %112 = arith.subf %88, %110 : vector<1x256xf32>
    %cst_30 = arith.constant 1.000000e+00 : f32
    %113 = vector.broadcast %cst_30 : f32 to vector<1x256xf32>
    %114 = arith.subf %113, %112 : vector<1x256xf32>
    %115 = arith.subf %89, %111 : vector<1x256xf32>
    %cst_31 = arith.constant 1.000000e+00 : f32
    %116 = vector.broadcast %cst_31 : f32 to vector<1x256xf32>
    %117 = arith.subf %116, %115 : vector<1x256xf32>
    %118 = arith.mulf %114, %117 : vector<1x256xf32>
    %cst_32 = arith.constant 0.000000e+00 : f32
    %119 = vector.broadcast %cst_32 : f32 to vector<1x256xf32>
    %120 = arith.cmpf oge, %110, %119 : vector<1x256xf32>
    %cst_33 = arith.constant 1.500000e+01 : f32
    %121 = vector.broadcast %cst_33 : f32 to vector<1x256xf32>
    %122 = arith.cmpf ole, %110, %121 : vector<1x256xf32>
    %123 = arith.andi %120, %122 : vector<1x256xi1>
    %cst_34 = arith.constant 0.000000e+00 : f32
    %124 = vector.broadcast %cst_34 : f32 to vector<1x256xf32>
    %125 = arith.cmpf oge, %111, %124 : vector<1x256xf32>
    %126 = arith.andi %123, %125 : vector<1x256xi1>
    %cst_35 = arith.constant 1.500000e+01 : f32
    %127 = vector.broadcast %cst_35 : f32 to vector<1x256xf32>
    %128 = arith.cmpf ole, %111, %127 : vector<1x256xf32>
    %129 = arith.andi %126, %128 : vector<1x256xi1>
    %130 = arith.mulf %118, %109 : vector<1x256xf32>
    %cst_36 = arith.constant 0.000000e+00 : f32
    %131 = vector.broadcast %cst_36 : f32 to vector<1x256xf32>
    %132 = arith.select %129, %130, %131 : vector<1x256xi1>, vector<1x256xf32>
    %cst_37 = arith.constant 1.000000e+00 : f32
    %133 = vector.broadcast %cst_37 : f32 to vector<1x256xf32>
    %134 = arith.addf %110, %133 : vector<1x256xf32>
    %135 = arith.mulf %112, %117 : vector<1x256xf32>
    %cst_38 = arith.constant 0.000000e+00 : f32
    %136 = vector.broadcast %cst_38 : f32 to vector<1x256xf32>
    %137 = arith.cmpf oge, %134, %136 : vector<1x256xf32>
    %cst_39 = arith.constant 1.500000e+01 : f32
    %138 = vector.broadcast %cst_39 : f32 to vector<1x256xf32>
    %139 = arith.cmpf ole, %134, %138 : vector<1x256xf32>
    %140 = arith.andi %137, %139 : vector<1x256xi1>
    %cst_40 = arith.constant 0.000000e+00 : f32
    %141 = vector.broadcast %cst_40 : f32 to vector<1x256xf32>
    %142 = arith.cmpf oge, %111, %141 : vector<1x256xf32>
    %143 = arith.andi %140, %142 : vector<1x256xi1>
    %cst_41 = arith.constant 1.500000e+01 : f32
    %144 = vector.broadcast %cst_41 : f32 to vector<1x256xf32>
    %145 = arith.cmpf ole, %111, %144 : vector<1x256xf32>
    %146 = arith.andi %143, %145 : vector<1x256xi1>
    %147 = arith.mulf %135, %109 : vector<1x256xf32>
    %cst_42 = arith.constant 0.000000e+00 : f32
    %148 = vector.broadcast %cst_42 : f32 to vector<1x256xf32>
    %149 = arith.select %146, %147, %148 : vector<1x256xi1>, vector<1x256xf32>
    %cst_43 = arith.constant 1.000000e+00 : f32
    %150 = vector.broadcast %cst_43 : f32 to vector<1x256xf32>
    %151 = arith.addf %111, %150 : vector<1x256xf32>
    %152 = arith.mulf %114, %115 : vector<1x256xf32>
    %cst_44 = arith.constant 0.000000e+00 : f32
    %153 = vector.broadcast %cst_44 : f32 to vector<1x256xf32>
    %154 = arith.cmpf oge, %110, %153 : vector<1x256xf32>
    %cst_45 = arith.constant 1.500000e+01 : f32
    %155 = vector.broadcast %cst_45 : f32 to vector<1x256xf32>
    %156 = arith.cmpf ole, %110, %155 : vector<1x256xf32>
    %157 = arith.andi %154, %156 : vector<1x256xi1>
    %cst_46 = arith.constant 0.000000e+00 : f32
    %158 = vector.broadcast %cst_46 : f32 to vector<1x256xf32>
    %159 = arith.cmpf oge, %151, %158 : vector<1x256xf32>
    %160 = arith.andi %157, %159 : vector<1x256xi1>
    %cst_47 = arith.constant 1.500000e+01 : f32
    %161 = vector.broadcast %cst_47 : f32 to vector<1x256xf32>
    %162 = arith.cmpf ole, %151, %161 : vector<1x256xf32>
    %163 = arith.andi %160, %162 : vector<1x256xi1>
    %164 = arith.mulf %152, %109 : vector<1x256xf32>
    %cst_48 = arith.constant 0.000000e+00 : f32
    %165 = vector.broadcast %cst_48 : f32 to vector<1x256xf32>
    %166 = arith.select %163, %164, %165 : vector<1x256xi1>, vector<1x256xf32>
    %cst_49 = arith.constant 1.000000e+00 : f32
    %167 = vector.broadcast %cst_49 : f32 to vector<1x256xf32>
    %168 = arith.addf %110, %167 : vector<1x256xf32>
    %cst_50 = arith.constant 1.000000e+00 : f32
    %169 = vector.broadcast %cst_50 : f32 to vector<1x256xf32>
    %170 = arith.addf %111, %169 : vector<1x256xf32>
    %171 = arith.mulf %112, %115 : vector<1x256xf32>
    %cst_51 = arith.constant 0.000000e+00 : f32
    %172 = vector.broadcast %cst_51 : f32 to vector<1x256xf32>
    %173 = arith.cmpf oge, %168, %172 : vector<1x256xf32>
    %cst_52 = arith.constant 1.500000e+01 : f32
    %174 = vector.broadcast %cst_52 : f32 to vector<1x256xf32>
    %175 = arith.cmpf ole, %168, %174 : vector<1x256xf32>
    %176 = arith.andi %173, %175 : vector<1x256xi1>
    %cst_53 = arith.constant 0.000000e+00 : f32
    %177 = vector.broadcast %cst_53 : f32 to vector<1x256xf32>
    %178 = arith.cmpf oge, %170, %177 : vector<1x256xf32>
    %179 = arith.andi %176, %178 : vector<1x256xi1>
    %cst_54 = arith.constant 1.500000e+01 : f32
    %180 = vector.broadcast %cst_54 : f32 to vector<1x256xf32>
    %181 = arith.cmpf ole, %170, %180 : vector<1x256xf32>
    %182 = arith.andi %179, %181 : vector<1x256xi1>
    %183 = arith.mulf %171, %109 : vector<1x256xf32>
    %cst_55 = arith.constant 0.000000e+00 : f32
    %184 = vector.broadcast %cst_55 : f32 to vector<1x256xf32>
    %185 = arith.select %182, %183, %184 : vector<1x256xi1>, vector<1x256xf32>
    %cst_56 = arith.constant 1.600000e+01 : f32
    %186 = vector.broadcast %cst_56 : f32 to vector<1x256xf32>
    %187 = arith.mulf %111, %186 : vector<1x256xf32>
    %188 = arith.addf %187, %110 : vector<1x256xf32>
    %189 = arith.fptosi %188 : vector<1x256xf32> to vector<1x256xi32>
    %c256_i32 = arith.constant 256 : i32
    %190 = arith.muli %arg2, %c256_i32 : i32
    %191 = vector.broadcast %190 : i32 to vector<1x256xi32>
    %192 = arith.subi %189, %191 : vector<1x256xi32>
    %193 = tpu.iota {dimensions = array<i32: 0>} : vector<256x256xi32>
    %194 = vector.broadcast %192 : vector<1x256xi32> to vector<256x256xi32>
    %195 = arith.cmpi eq, %193, %194 : vector<256x256xi32>
    %cst_57 = arith.constant 0.000000e+00 : f32
    %196 = vector.shape_cast %132 : vector<1x256xf32> to vector<1x256xf32>
    %197 = vector.broadcast %196 : vector<1x256xf32> to vector<256x256xf32>
    %198 = vector.broadcast %cst_57 : f32 to vector<256x256xf32>
    %199 = arith.select %195, %197, %198 : vector<256x256xi1>, vector<256x256xf32>
    %c1_i32_58 = arith.constant 1 : i32
    %200 = vector.broadcast %c1_i32_58 : i32 to vector<1x256xi32>
    %201 = arith.addi %192, %200 : vector<1x256xi32>
    %202 = vector.broadcast %201 : vector<1x256xi32> to vector<256x256xi32>
    %203 = arith.cmpi eq, %193, %202 : vector<256x256xi32>
    %204 = vector.shape_cast %149 : vector<1x256xf32> to vector<1x256xf32>
    %205 = vector.broadcast %204 : vector<1x256xf32> to vector<256x256xf32>
    %206 = arith.select %203, %205, %199 : vector<256x256xi1>, vector<256x256xf32>
    %c16_i32_59 = arith.constant 16 : i32
    %207 = vector.broadcast %c16_i32_59 : i32 to vector<1x256xi32>
    %208 = arith.addi %192, %207 : vector<1x256xi32>
    %209 = vector.broadcast %208 : vector<1x256xi32> to vector<256x256xi32>
    %210 = arith.cmpi eq, %193, %209 : vector<256x256xi32>
    %211 = vector.shape_cast %166 : vector<1x256xf32> to vector<1x256xf32>
    %212 = vector.broadcast %211 : vector<1x256xf32> to vector<256x256xf32>
    %213 = arith.select %210, %212, %206 : vector<256x256xi1>, vector<256x256xf32>
    %c17_i32 = arith.constant 17 : i32
    %214 = vector.broadcast %c17_i32 : i32 to vector<1x256xi32>
    %215 = arith.addi %192, %214 : vector<1x256xi32>
    %216 = vector.broadcast %215 : vector<1x256xi32> to vector<256x256xi32>
    %217 = arith.cmpi eq, %193, %216 : vector<256x256xi32>
    %218 = vector.shape_cast %185 : vector<1x256xf32> to vector<1x256xf32>
    %219 = vector.broadcast %218 : vector<1x256xf32> to vector<256x256xf32>
    %220 = arith.select %217, %219, %213 : vector<256x256xi1>, vector<256x256xf32>
    %c0_60 = arith.constant 0 : index
    %c0_61 = arith.constant 0 : index
    %221 = vector.load %arg6[%c0_60, %c0_61] : memref<8x256xf32, #tpu.memory_space<vmem>>, vector<8x256xf32>
    %c0_62 = arith.constant 0 : index
    %c0_63 = arith.constant 0 : index
    %c0_64 = arith.constant 0 : index
    %222 = vector.load %arg5[%c0_62, %c0_63, %c0_64] : memref<1x8x256xf32, #tpu.memory_space<vmem>>, vector<1x8x256xf32>
    %223 = vector.shape_cast %222 : vector<1x8x256xf32> to vector<8x256xf32>
    %cst_65 = arith.constant dense<0.000000e+00> : vector<8x256xf32>
    %224 = tpu.matmul %223, %220, %cst_65 {dimension_numbers = #tpu.dot_dimension_numbers<[1], [0], [0], [1], [0, 0, 1, 1], [], []>} : vector<8x256xf32>, vector<256x256xf32>, vector<8x256xf32> -> vector<8x256xf32>
    %225 = arith.addf %221, %224 : vector<8x256xf32>
    %c0_66 = arith.constant 0 : index
    %c0_67 = arith.constant 0 : index
    %226 = vector.load %arg6[%c0_66, %c0_67] : memref<8x256xf32, #tpu.memory_space<vmem>>, vector<8x256xf32>
    tpu.vector_store %arg6[%c0_66, %c0_67], %225 {strides = array<i32>} : memref<8x256xf32, #tpu.memory_space<vmem>>, vector<8x256xf32>,
    %c0_i32_68 = arith.constant 0 : i32
    %227 = arith.cmpi eq, %arg2, %c0_i32_68 : i32
    %228 = arith.extui %227 : i1 to i32
    %c0_i32_69 = arith.constant 0 : i32
    %229 = arith.cmpi ne, %228, %c0_i32_69 : i32
    scf.if %229 {
      %c0_70 = arith.constant 0 : index
      %c0_71 = arith.constant 0 : index
      %230 = vector.load %arg7[%c0_70, %c0_71] : memref<1x256xf32, #tpu.memory_space<vmem>>, vector<1x256xf32>
      %231 = arith.addf %230, %109 : vector<1x256xf32>
      %c0_72 = arith.constant 0 : index
      %c0_73 = arith.constant 0 : index
      %232 = vector.load %arg7[%c0_72, %c0_73] : memref<1x256xf32, #tpu.memory_space<vmem>>, vector<1x256xf32>
      tpu.vector_store %arg7[%c0_72, %c0_73], %231 {strides = array<i32>} : memref<1x256xf32, #tpu.memory_space<vmem>>, vector<1x256xf32>,
      %233 = vector.shape_cast %93 : vector<1x256xf32> to vector<1x1x256xf32>
      %c0_74 = arith.constant 0 : index
      %c0_75 = arith.constant 0 : index
      %c0_76 = arith.constant 0 : index
      %234 = vector.load %arg8[%c0_74, %c0_75, %c0_76] : memref<1x1x256xf32, #tpu.memory_space<vmem>>, vector<1x1x256xf32>
      tpu.vector_store %arg8[%c0_74, %c0_75, %c0_76], %233 {strides = array<i32>} : memref<1x1x256xf32, #tpu.memory_space<vmem>>, vector<1x1x256xf32>,
      %235 = vector.shape_cast %97 : vector<1x256xf32> to vector<1x1x256xf32>
      %c0_77 = arith.constant 0 : index
      %c0_78 = arith.constant 0 : index
      %c0_79 = arith.constant 0 : index
      %236 = vector.load %arg9[%c0_77, %c0_78, %c0_79] : memref<1x1x256xf32, #tpu.memory_space<vmem>>, vector<1x1x256xf32>
      tpu.vector_store %arg9[%c0_77, %c0_78, %c0_79], %235 {strides = array<i32>} : memref<1x1x256xf32, #tpu.memory_space<vmem>>, vector<1x1x256xf32>,
      %237 = vector.shape_cast %109 : vector<1x256xf32> to vector<1x1x256xf32>
      %c0_80 = arith.constant 0 : index
      %c0_81 = arith.constant 0 : index
      %c0_82 = arith.constant 0 : index
      %238 = vector.load %arg10[%c0_80, %c0_81, %c0_82] : memref<1x1x256xf32, #tpu.memory_space<vmem>>, vector<1x1x256xf32>
      tpu.vector_store %arg10[%c0_80, %c0_81, %c0_82], %237 {strides = array<i32>} : memref<1x1x256xf32, #tpu.memory_space<vmem>>, vector<1x1x256xf32>,
    } else {
    }
    return
  }
  func.func @transform_0(%arg0: i32, %arg1: i32, %arg2: i32) -> i32 {
    %c0_i32 = arith.constant 0 : i32
    %c0_i32_0 = arith.constant 0 : i32
    return %c0_i32 : i32
  }
  func.func @transform_1(%arg0: i32, %arg1: i32, %arg2: i32) -> (i32, i32) {
    %c0_i32 = arith.constant 0 : i32
    %c0_i32_0 = arith.constant 0 : i32
    return %c0_i32, %arg0 : i32, i32
  }
  func.func @transform_2(%arg0: i32, %arg1: i32, %arg2: i32) -> (i32, i32, i32) {
    %c0_i32 = arith.constant 0 : i32
    %c0_i32_0 = arith.constant 0 : i32
    return %arg1, %c0_i32, %arg2 : i32, i32, i32
  }
  func.func @transform_3(%arg0: i32, %arg1: i32, %arg2: i32) -> (i32, i32) {
    %c0_i32 = arith.constant 0 : i32
    %c0_i32_0 = arith.constant 0 : i32
    return %c0_i32, %arg0 : i32, i32
  }
  func.func @transform_4(%arg0: i32, %arg1: i32, %arg2: i32) -> (i32, i32) {
    %c0_i32 = arith.constant 0 : i32
    %c0_i32_0 = arith.constant 0 : i32
    return %c0_i32, %arg0 : i32, i32
  }
  func.func @transform_5(%arg0: i32, %arg1: i32, %arg2: i32) -> (i32, i32, i32) {
    %c0_i32 = arith.constant 0 : i32
    %c0_i32_0 = arith.constant 0 : i32
    return %arg1, %c0_i32, %arg0 : i32, i32, i32
  }
  func.func @transform_6(%arg0: i32, %arg1: i32, %arg2: i32) -> (i32, i32, i32) {
    %c0_i32 = arith.constant 0 : i32
    %c0_i32_0 = arith.constant 0 : i32
    return %arg1, %c0_i32, %arg0 : i32, i32, i32
  }
  func.func @transform_7(%arg0: i32, %arg1: i32, %arg2: i32) -> (i32, i32, i32) {
    %c0_i32 = arith.constant 0 : i32
    %c0_i32_0 = arith.constant 0 : i32
    return %arg1, %c0_i32, %arg0 : i32, i32, i32
  }
}

</mosaic_0001>

<bundles_post_ra>
// kernel: _project_batch.1
= control target key start
LH: loop header
LB: loop body
LE: loop exit
PB: predicated region body
PF: predicated region fallthrough
CT: control target
= control target key end

     0   :  { %s3143_s0 = inlined_call_operand.vmem [shape: f32[48], index: 0, kind: input, shape index: {}]   ;;  %s3144_s1 = inlined_call_operand.vmem [shape: f32[8,256], index: 1, kind: input, shape index: {}]   ;;  %s3145_s2 = inlined_call_operand.vmem [shape: f32[3,8,256], index: 2, kind: input, shape index: {}]   ;;  %s3146_s3 = inlined_call_operand.hbm [shape: f32[8,256], index: 3, kind: output, shape index: {0}]   ;;  %s3147_s4 = inlined_call_operand.hbm [shape: f32[1,256], index: 4, kind: output, shape index: {1}]   ;;  %s3148_s5 = inlined_call_operand.hbm [shape: f32[3,1,256], index: 5, kind: output, shape index: {2}]   ;;  %s3149_s6 = inlined_call_operand.hbm [shape: f32[3,1,256], index: 6, kind: output, shape index: {3}]   ;;  %s3150_s7 = inlined_call_operand.hbm [shape: f32[3,1,256], index: 7, kind: output, shape index: {4}]  }
   0x1   :  { %3158 = sst [smem:[#allocation21_spill]] %s3143_s0 }
   0x2   :  { %3159 = sst [smem:[#allocation22_spill]] %s3145_s2 }
   0x3   :  { %13 = vsyncpa [#allocation4], 0 }
   0x4   :  { %14 = vsyncpa [#allocation3], 0 }
   0x5   :  { %15 = vsyncpa [#allocation7], 0  ;;  %s1896_s24 = smov 0   ;;  %s1898_s25 = smov 0  }
   0x6   :  { %s1900_s26 = smov 0   ;;  %s1902_s27 = smov 0  }
   0x7   :  { %s1904_s28 = smov 0   ;;  %s1906_s29 = smov 0  }
   0x8 LB: > { %3160 = sst [smem:[#allocation15_spill]] %s1830_s25  ;;  %s1925_s30 = sadd.s32 4294967295, %s1846_s29   ;;  %s1846_s29 = sphi %s1906_s29, %s21_s29   ;;  %s1842_s28 = sphi %s1904_s28, %s3197_s28   ;;  %s1838_s27 = sphi %s1902_s27, %s3196_s27   ;;  %s1834_s26 = sphi %s1900_s26, %s3195_s26   ;;  %s1830_s25 = sphi %s1898_s25, %s3194_s25   ;;  %s1826_s24 = sphi %s1896_s24, %s3193_s24  }
   0x9   : > { %3161 = sst [smem:[#allocation16_spill]] %s1834_s26  ;;  %s3152_s8 = sadd.s32 4294967294, %s1846_s29  }
   0xa   : > { %3162 = sst [smem:[#allocation17_spill]] %s1842_s28  ;;  %s36_s9 = sadd.s32 1, %s1842_s28 }
   0xb   : > { %s176_s10 = sadd.s32 1, %s1834_s26  ;;  %p38_p0 = scmp.ge.s32.totalorder %s36_s9, 3 }
   0xc   : > { %p186_p1 = scmp.ne.s32.totalorder %s1834_s26, %s1830_s25  ;;  %p3151_p2 = scmp.eq.s32.totalorder %s1925_s30, 2 }
   0xd   : > { %p192_p3 = scmp.ne.s32.totalorder %s1830_s25, %s1826_s24  ;;  %s3199_s9 = smov (%p38_p0, %s36_s9), 0 }
   0xe   : > { %3163 = sst [smem:[#allocation18_spill]] %s3199_s9  ;;  %p1938_p4 = por %p3151_p2, %p186_p1 }
   0xf   : > { %p193_p5 = scmp.eq.s32.totalorder %s3152_s8, 2  ;;  %s171_s12 = ssub.s32 %s1842_s28, %s3199_s9 }
  0x10   : > { %p1509_p6 = scmp.ge.s32.totalorder %s1846_s29, 1  ;;  %p174_p7 = scmp.eq.s32.totalorder %s171_s12, 0 }
  0x11   : > { %p1947_p8 = por %p193_p5, %p192_p3  ;;  %p256_p9 = scmp.lt.s32.totalorder %s1846_s29, 4 }
  0x12   : > { %s1953_s14 = scalar_select %p174_p7, %s1834_s26, %s176_s10  }
  0x13   : > { %s3165_s13 = scalar_select %p1947_p8, 1, 0 }
  0x14   : > { %3167 = sst [smem:[#allocation20_spill]] %s1953_s14  ;;  %p1955_p10 = pnand %p1509_p6, %p256_p9 }
  0x15   : > { %3166 = sst [smem:[#allocation19_spill]] %s3165_s13  ;;  %p1581_p11 = scmp.eq.s32.totalorder %s1925_s30, 0 }
  0x16   : > { %s3169_s0 = sld [smem:[#allocation21_spill]]  ;;  %p1567_p12 = pneg %p1955_p10 }
  0x18   : > { %p1568_p13 = pnand %p1581_p11, %p1567_p12 }
  0x1a   : > { %p1645_p1 = pneg %p1568_p13 }
  0x1c   : > { %s269_s18 = sshll.u32 %s3169_s0, 4  ;;  %s270_s18 = int_to_ptr.vmem [resolvable:$true] %s269_s18 }
  0x1d   : > { %s1643_s19 = scalar_lea.vmem %s270_s18, 16  ;;  %p1651_p6 = scmp.lt.s32.totalorder %s270_s18, %s270_s18 }
  0x1e   : > { %p1644_p0 = scmp.ne.s32.totalorder %s270_s18, %s1643_s19  ;;  %p1652_p7 = scmp.lt.s32.totalorder %s1643_s19, %s1643_s19 }
  0x20   : > { %p1646_p3 = pnand %p1645_p1, %p1644_p0  ;;  %p1653_p9 = por %p1652_p7, %p1651_p6 }
  0x22   : > { %p1647_p5 = pneg %p1646_p3 }
  0x24   : > { %p1654_p2 = pnand %p1653_p9, %p1647_p5 }
  0x26   : > { %1657 = shalt.err (!%p1654_p2)
}
  0x27   : > { %s1848_s20 = smov [#allocation2]   ;;  %304 = sbr.rel (%p1955_p10) target bundleno = 516 (0x204), region = 32 }
  0x28   : > { %1570 = dma.vmem_to_smem (!%p1568_p13), %s270_s18, 16, %s1848_s20, [#allocation4]  }
  0x2c   : > { %1809 = dma.done.wait (%p1581_p11), [#allocation4], 16  }
  0x2d   : > { %1811 = vsyncadd (%p1581_p11), [#allocation4], 4294967280 }
  0x2e   : > { %310 = sfence }
  0x2f   : > { %s339_s21 = sand.u32 1, %s1830_s25   ;;  %p363_p12 = scmp.lt.s32.totalorder %s1838_s27, 2 }
  0x30   : > { %s1975_s22 = sshll.u32 %s339_s21, 1  ;;  %p377_p2 = scmp.eq.s32.totalorder %s1838_s27, 0 }
  0x31   : > { %s364_s23 = scalar_select %p363_p12, %s1838_s27, 2  ;;  %v385_v0 = vlaneseq (%p377_p2)  ;;  %v1849_v1 = vmov (%p377_p2), 0.0  }
  0x32   : > { %s3170_s2 = sld [smem:[#allocation22_spill]]  ;;  %383 = vst [vmem:[#allocation5] sm:$0xff] (%p377_p2), %v1849_v1  ;;  %384 = vst [vmem:[#allocation5 + $0x8] sm:$0xff] (%p377_p2), %v1849_v1 }
  0x33   : > { %s1542_s24 = sshll.u32 %s364_s23, 4  ;;  %vm387_vm0 = vcmp.lt.s32.totalorder (%p377_p2), %v385_v0, 256 }
  0x34   : > { %382 = sbr.rel (!%p377_p2) target bundleno = 57 (0x39), region = 40  ;;  %389 = vst.msk [vmem:[#allocation6] sm:$0x3] (%p377_p2), %vm387_vm0, %v1849_v1 }
  0x38   : > { %s1982_s15 = scalar_lea.vmem %s3170_s2, %s1542_s24 }
  0x39 PF: > { %s1988_s19 = sshll.u32 %s1838_s27, 4  ;;  %v390_v2 = vld [vmem:[%s3144_s1] ss:$8 sm:$0x3]  ;;  %v509_v29 = vlaneseq  ;;  %p3180_p11 = scmp.eq.s32.totalorder %s1925_s30, 2 }
  0x3a   : > { %s399_s20 = sadd.s32 1, %s1988_s19  ;;  %s413_s21 = sadd.s32 4, %s1988_s19  ;;  %v1521_v3 = vld [vmem:[%s3144_s1 + $0x1] ss:$8 sm:$0x3] }
  0x3b   : > { %s1993_s23 = sld [smem:[#allocation2 + %s1988_s19]]  ;;  %s417_s24 = sadd.s32 5, %s1988_s19  ;;  %v1522_v4 = vld [vmem:[%s3144_s1 + $0x2] ss:$8 sm:$0x3]  ;;  %v2027_v34 = vshrl.u32 %v509_v29, 7 }
  0x3c   : > { %s1996_s10 = sld [smem:[#allocation2 + %s399_s20]]  ;;  %s431_s18 = sadd.s32 8, %s1988_s19 }
  0x3d   : > { %s1998_s12 = sld [smem:[#allocation2 + %s413_s21]]  ;;  %s435_s16 = sadd.s32 9, %s1988_s19  ;;  %v2030_v37 = vadd.s32 120, %v2027_v34  ;;  %v2033_v38 = vsub.s32 1, %v2027_v34  ;;  %v2036_v39 = vsub.s32 0, %v2027_v34  ;;  %v2039_v40 = vadd.s32 112, %v2027_v34 }
  0x3e   : > { %s2000_s8 = sld [smem:[#allocation2 + %s417_s24]]  ;;  %s440_s2 = sadd.s32 10, %s1988_s19  ;;  %v2042_v41 = vadd.s32 104, %v2027_v34  ;;  %v2045_v42 = vadd.s32 96, %v2027_v34  ;;  %v2048_v43 = vadd.s32 88, %v2027_v34  ;;  %v2051_v44 = vadd.s32 80, %v2027_v34 }
  0x3f   : > { %s432_s17 = sld [smem:[#allocation2 + %s431_s18]]  ;;  %s445_s28 = sadd.s32 11, %s1988_s19  ;;  %v2054_v46 = vadd.s32 72, %v2027_v34  ;;  %v2057_v47 = vadd.s32 64, %v2027_v34  ;;  %v2060_v48 = vadd.s32 56, %v2027_v34  ;;  %v2063_v49 = vadd.s32 48, %v2027_v34 }
  0x40   : > { %s436_s0 = sld [smem:[#allocation2 + %s435_s16]]  ;;  %s404_s14 = sadd.s32 2, %s1988_s19  ;;  %v2066_v52 = vadd.s32 40, %v2027_v34  ;;  %v2069_v53 = vadd.s32 32, %v2027_v34  ;;  %v2072_v54 = vadd.s32 24, %v2027_v34  ;;  %v2075_v55 = vadd.s32 16, %v2027_v34 }
  0x41   : > { %s441_s9 = sld [smem:[#allocation2 + %s440_s2]]  ;;  %s422_s20 = sadd.s32 6, %s1988_s19  ;;  %v397_v11 = vstv %s1993_s23  ;;  %v2078_v56 = vadd.s32 8, %v2027_v34  ;;  %v2081_v57 = vadd.s32 248, %v2027_v34  ;;  %v2084_v62 = vadd.s32 240, %v2027_v34 }
  0x42   : > { %s446_s26 = sld [smem:[#allocation2 + %s445_s28]]  ;;  %v401_v13 = vstv %s1996_s10  ;;  %s409_s25 = sadd.s32 3, %s1988_s19  ;;  %v398_v18 = vmul.f32 %v397_v11, %v390_v2  ;;  %v2087_v63 = vadd.s32 232, %v2027_v34  ;;  %v2090_v0 = vadd.s32 224, %v2027_v34 }
  0x43   : > { %s405_s2 = sld [smem:[#allocation2 + %s404_s14]]  ;;  %v415_v14 = vstv %s1998_s12  ;;  %s427_s13 = sadd.s32 7, %s1988_s19  ;;  %v402_v19 = vmul.f32 %v1521_v3, %v401_v13  ;;  %v2093_v1 = vadd.s32 216, %v2027_v34 }
  0x44   : > { %s423_s28 = sld [smem:[#allocation2 + %s422_s20]]  ;;  %v419_v15 = vstv %s2000_s8  ;;  %v416_v20 = vmul.f32 %v415_v14, %v390_v2  ;;  %s3178_s8 = scalar_lea.vmem [#allocation9], %s1975_s22 }
  0x45   : > { %v433_v5 = vstv %s432_s17  ;;  %s410_s21 = sld [smem:[#allocation2 + %s409_s25]]  ;;  %v420_v21 = vmul.f32 %v1521_v3, %v419_v15  ;;  %v403_v25 = vadd.f32 %v402_v19, %v398_v18  ;;  %v2115_v18 = vadd.s32 208, %v2027_v34  ;;  %s1851_s14 = smov [#allocation6]  }
  0x46   : > { %v434_v6 = vmul.f32 %v433_v5, %v390_v2  ;;  %v437_v7 = vstv %s436_s0  ;;  %s428_s0 = sld [smem:[#allocation2 + %s427_s13]] }
  0x47   : > { %v438_v8 = vmul.f32 %v1521_v3, %v437_v7  ;;  %v442_v9 = vstv %s441_s9  ;;  %v421_v27 = vadd.f32 %v420_v21, %v416_v20  ;;  %v2120_v21 = vadd.s32 200, %v2027_v34  ;;  %s3179_s9 = scalar_lea.vmem [#allocation10], %s1975_s22 }
  0x48   : > { %v443_v10 = vmul.f32 %v1522_v4, %v442_v9  ;;  %v447_v16 = vstv %s446_s26  ;;  %s3177_s26 = scalar_lea.vmem [#allocation8], %s1975_s22 }
  0x49   : > { %v439_v12 = vadd.f32 %v438_v8, %v434_v6  ;;  %v406_v23 = vstv %s405_s2 }
  0x4a   : > { %v424_v24 = vstv %s423_s28  ;;  %v407_v26 = vmul.f32 %v1522_v4, %v406_v23  ;;  %v2123_v23 = vadd.s32 192, %v2027_v34 }
  0x4b   : > { %v444_v17 = vadd.f32 %v443_v10, %v439_v12  ;;  %v425_v28 = vmul.f32 %v1522_v4, %v424_v24  ;;  %v411_v32 = vstv %s410_s21  ;;  %v1850_v24 = vmov 0.0  }
  0x4c   : > { %v408_v30 = vadd.f32 %v407_v26, %v403_v25  ;;  %v429_v33 = vstv %s428_s0 }
  0x4d   : > { %v2023_v22 = vadd.f32 %v447_v16, %v444_v17  ;;  %v426_v31 = vadd.f32 %v425_v28, %v421_v27  ;;  %v2132_v27 = vadd.s32 184, %v2027_v34 }
  0x4e   : > { %v412_v35 = vadd.f32 %v411_v32, %v408_v30 }
  0x4f   : > { %1641 = vrcp.f32 %v2023_v22  ;;  %v430_v36 = vadd.f32 %v429_v33, %v426_v31  ;;  %vm461_vm6 = vcmp.gt.f32.partialorder %v2023_v22, 0.0  ;;  %v2135_v22 = vadd.s32 176, %v2027_v34 }
  0x50   : > { %v2145_v33 = vadd.s32 168, %v2027_v34 }
  0x5c   : > { %v1642_v45 = vpop.eup %1641 }
  0x5d   : > { %v450_v50 = vmul.f32 %v1642_v45, %v412_v35  ;;  %v451_v51 = vmul.f32 %v1642_v45, %v430_v36  ;;  %v2148_v35 = vadd.s32 160, %v2027_v34  ;;  %v2151_v36 = vadd.s32 152, %v2027_v34 }
  0x5f   : > { %v452_v58 = vmul.f32 0.13333334, %v450_v50  ;;  %v454_v59 = vmul.f32 0.13333334, %v451_v51  ;;  %v465_v60 = vfloor.f32 %v450_v50  ;;  %v466_v61 = vfloor.f32 %v451_v51 }
  0x61   : > { %v2095_v2 = vadd.f32 -1.0, %v452_v58  ;;  %v2097_v3 = vadd.f32 -1.0, %v454_v59  ;;  %v467_v4 = vsub.f32 %v450_v50, %v465_v60  ;;  %v469_v5 = vsub.f32 %v451_v51, %v466_v61 }
  0x62   : > { %vm472_vm1 = vcmp.ge.f32.partialorder %v465_v60, 0.0  ;;  %vm473_vm2 = vcmp.le.f32.partialorder %v465_v60, 15.0  ;;  %vm475_vm3 = vcmp.ge.f32.partialorder %v466_v61, 0.0  ;;  %vm477_vm4 = vcmp.le.f32.partialorder %v466_v61, 15.0 }
  0x63   : > { %v456_v6 = vand.u32 2147483647, %v2095_v2  ;;  %v458_v7 = vand.u32 2147483647, %v2097_v3  ;;  %v468_v8 = vsub.f32 1.0, %v467_v4  ;;  %v470_v9 = vsub.f32 1.0, %v469_v5  ;;  %vm2101_vm5 = vmand %vm472_vm1, %vm473_vm2 }
  0x64   : > { %vm476_vm7 = vmand %vm2101_vm5, %vm475_vm3  ;;  %v481_v11 = vadd.f32 1.0, %v465_v60  ;;  %v490_v12 = vadd.f32 1.0, %v466_v61  ;;  %v503_v13 = vmul.f32 16.0, %v466_v61  ;;  %v498_v19 = vmul.f32 %v469_v5, %v467_v4 }
  0x65   : > { %vm457_vm8 = vcmp.le.f32.partialorder %v456_v6, 1.0  ;;  %vm459_vm9 = vcmp.le.f32.partialorder %v458_v7, 1.0  ;;  %v471_v14 = vmul.f32 %v470_v9, %v468_v8  ;;  %vm2110_vm10 = vmand %vm476_vm7, %vm477_vm4  ;;  %v482_v16 = vmul.f32 %v470_v9, %v467_v4 }
  0x66   : > { %vm460_vm11 = vmand %vm457_vm8, %vm459_vm9  ;;  %vm483_vm12 = vcmp.ge.f32.partialorder %v481_v11, 0.0  ;;  %vm484_vm13 = vcmp.le.f32.partialorder %v481_v11, 15.0  ;;  %v491_v17 = vmul.f32 %v469_v5, %v468_v8  ;;  %v504_v20 = vadd.f32 %v503_v13, %v465_v60 }
  0x67   : > { %vm462_vm14 = vmand %vm460_vm11, %vm461_vm6  ;;  %vm492_vm0 = vcmp.ge.f32.partialorder %v490_v12, 0.0  ;;  %vm494_vm2 = vcmp.le.f32.partialorder %v490_v12, 15.0  ;;  %v2160_v58 = vadd.s32 144, %v2027_v34  ;;  %v2167_v61 = vadd.s32 136, %v2027_v34 }
  0x68   : > { %v2125_v25 = vsel %vm462_vm14, 1.0, %v1850_v24  ;;  %vm2127_vm15 = vmand %vm483_vm12, %vm484_vm13  ;;  %v1547_v32 = vtrunc.f32 %v504_v20  ;;  %v2170_v4 = vadd.s32 128, %v2027_v34 }
  0x69   : > { %v479_v28 = vmul.f32 %v2125_v25, %v471_v14  ;;  %vm486_vm1 = vmand %vm2127_vm15, %vm475_vm3  ;;  %v488_v30 = vmul.f32 %v2125_v25, %v482_v16  ;;  %v496_v31 = vmul.f32 %v2125_v25, %v491_v17  ;;  %v501_v51 = vmul.f32 %v2125_v25, %v498_v19 }
  0x6a   : > { %vm487_vm6 = vmand %vm486_vm1, %vm477_vm4  ;;  %v1548_v59 = vcvt.f32.s32 %v1547_v32 }
  0x6b   : > { %v480_v45 = vsel %vm2110_vm10, %v479_v28, 0.0  ;;  %v489_v50 = vsel %vm487_vm6, %v488_v30, 0.0  ;;  %vm493_vm3 = vmand %vm2101_vm5, %vm492_vm0 }
  0x6c   : > { %vm495_vm4 = vmand %vm493_vm3, %vm494_vm2  ;;  %v2164_v60 = vrot.slane %v480_v45, %v2033_v38  ;;  %v2176_v6 = vrot.slane %v489_v50, %v2033_v38  ;;  %v2179_v7 = vrot.slane %v480_v45, %v2036_v39  ;;  %v2182_v8 = vrot.slane %v489_v50, %v2036_v39  ;;  %v1136_v45 = vld [vmem:[%s1982_s15 + $0x8] sm:$0xff] }
  0x6d   : > { %v497_v5 = vsel %vm495_vm4, %v496_v31, 0.0  ;;  %vm499_vm5 = vmand %vm2127_vm15, %vm492_vm0  ;;  %v2186_v9 = vrot.slane %v1548_v59, %v2033_v38  ;;  %v689_v10 = vadd.s32 1, %v1548_v59  ;;  %v837_v11 = vadd.s32 16, %v1548_v59  ;;  %1201 = vmatprep.mubr.f32.mxu0 %v1136_v45 }
  0x6e   : > { %vm500_vm7 = vmand %vm499_vm5, %vm494_vm2  ;;  %v2189_v13 = vrot.slane %v497_v5, %v2033_v38  ;;  %v985_v15 = vadd.s32 17, %v1548_v59  ;;  %v2192_v16 = vrot.slane %v1548_v59, %v2036_v39  ;;  %v2195_v17 = vrot.slane %v497_v5, %v2036_v39 }
  0x6f   : > { %v502_v14 = vsel %vm500_vm7, %v501_v51, 0.0  ;;  %vm581_vm8 = vcmp.eq.s32.totalorder %v2030_v37, %v2186_v9  ;;  %v2200_v12 = vrot.slane %v689_v10, %v2033_v38  ;;  %v2203_v19 = vrot.slane %v837_v11, %v2033_v38 }
  0x70   : > { %v2206_v20 = vrot.slane %v502_v14, %v2033_v38  ;;  %v656_v24 = vsel %vm581_vm8, %v2164_v60, 0.0  ;;  %v2210_v26 = vrot.slane %v985_v15, %v2033_v38  ;;  %vm580_vm9 = vcmp.eq.s32.totalorder %v2030_v37, %v2192_v16 }
  0x71   : > { %v2215_v28 = vrot.slane %v689_v10, %v2036_v39  ;;  %vm729_vm10 = vcmp.eq.s32.totalorder %v2030_v37, %v2200_v12  ;;  %vm877_vm11 = vcmp.eq.s32.totalorder %v2030_v37, %v2203_v19  ;;  %v655_v30 = vsel %vm580_vm9, %v2179_v7, 0.0 }
  0x72   : > { %v2223_v31 = vrot.slane %v837_v11, %v2036_v39  ;;  %v804_v38 = vsel %vm729_vm10, %v2176_v6, %v656_v24  ;;  %vm1025_vm12 = vcmp.eq.s32.totalorder %v2030_v37, %v2210_v26  ;;  %v2231_v32 = vrot.slane %v985_v15, %v2036_v39 }
  0x73   : > { %vm728_vm13 = vcmp.eq.s32.totalorder %v2030_v37, %v2215_v28  ;;  %v952_v50 = vsel %vm877_vm11, %v2189_v13, %v804_v38  ;;  %v2239_v59 = vrot.slane %v502_v14, %v2036_v39  ;;  %vm579_vm0 = vcmp.eq.s32.totalorder %v2039_v40, %v2186_v9 }
  0x74   : > { %v803_v51 = vsel %vm728_vm13, %v2182_v8, %v655_v30  ;;  %vm876_vm14 = vcmp.eq.s32.totalorder %v2030_v37, %v2223_v31  ;;  %v1100_v5 = vsel %vm1025_vm12, %v2206_v20, %v952_v50  ;;  %vm1024_vm15 = vcmp.eq.s32.totalorder %v2030_v37, %v2231_v32 }
  0x75   : > { %v951_v10 = vsel %vm876_vm14, %v2195_v17, %v803_v51  ;;  %1137 = vmatprep.subr.mxu0 %v1100_v5  ;;  %v654_v15 = vsel %vm579_vm0, %v2164_v60, 0.0  ;;  %vm727_vm1 = vcmp.eq.s32.totalorder %v2039_v40, %v2200_v12  ;;  %vm875_vm2 = vcmp.eq.s32.totalorder %v2039_v40, %v2203_v19 }
  0x76   : > { %v1099_v11 = vsel %vm1024_vm15, %v2239_v59, %v951_v10  ;;  %v802_v39 = vsel %vm727_vm1, %v2176_v6, %v654_v15  ;;  %vm1023_vm6 = vcmp.eq.s32.totalorder %v2039_v40, %v2210_v26  ;;  %vm578_vm3 = vcmp.eq.s32.totalorder %v2039_v40, %v2192_v16 }
  0x77   : > { %1138 = vmatpush1.msra.mxu0 %v1099_v11  ;;  %vm726_vm4 = vcmp.eq.s32.totalorder %v2039_v40, %v2215_v28  ;;  %v950_v37 = vsel %vm875_vm2, %v2189_v13, %v802_v39  ;;  %v653_v14 = vsel %vm578_vm3, %v2179_v7, 0.0  ;;  %vm874_vm5 = vcmp.eq.s32.totalorder %v2039_v40, %v2223_v31 }
  0x78   : > { %vm1022_vm7 = vcmp.eq.s32.totalorder %v2039_v40, %v2231_v32  ;;  %v1098_v24 = vsel %vm1023_vm6, %v2206_v20, %v950_v37  ;;  %v801_v30 = vsel %vm726_vm4, %v2182_v8, %v653_v14  ;;  %vm577_vm8 = vcmp.eq.s32.totalorder %v2042_v41, %v2186_v9 }
  0x79   : > { %vm725_vm9 = vcmp.eq.s32.totalorder %v2042_v41, %v2200_v12  ;;  %1139 = vmatprep.subr.mxu0 %v1098_v24  ;;  %v949_v38 = vsel %vm874_vm5, %v2195_v17, %v801_v30  ;;  %v652_v45 = vsel %vm577_vm8, %v2164_v60, 0.0  ;;  %vm873_vm10 = vcmp.eq.s32.totalorder %v2042_v41, %v2203_v19 }
  0x7a   : > { %vm1021_vm11 = vcmp.eq.s32.totalorder %v2042_v41, %v2210_v26  ;;  %v1097_v40 = vsel %vm1022_vm7, %v2239_v59, %v949_v38  ;;  %v800_v50 = vsel %vm725_vm9, %v2176_v6, %v652_v45  ;;  %vm576_vm12 = vcmp.eq.s32.totalorder %v2042_v41, %v2192_v16 }
  0x7b   : > { %vm724_vm13 = vcmp.eq.s32.totalorder %v2042_v41, %v2215_v28  ;;  %1140 = vmatpush1.msra.mxu0 %v1097_v40  ;;  %v948_v51 = vsel %vm873_vm10, %v2189_v13, %v800_v50  ;;  %v651_v5 = vsel %vm576_vm12, %v2179_v7, 0.0  ;;  %vm872_vm14 = vcmp.eq.s32.totalorder %v2042_v41, %v2223_v31 }
  0x7c   : > { %vm1020_vm15 = vcmp.eq.s32.totalorder %v2042_v41, %v2231_v32  ;;  %v1096_v10 = vsel %vm1021_vm11, %v2206_v20, %v948_v51  ;;  %v799_v11 = vsel %vm724_vm13, %v2182_v8, %v651_v5  ;;  %vm575_vm0 = vcmp.eq.s32.totalorder %v2045_v42, %v2186_v9 }
  0x7d   : > { %vm723_vm1 = vcmp.eq.s32.totalorder %v2045_v42, %v2200_v12  ;;  %1141 = vmatprep.subr.mxu0 %v1096_v10  ;;  %v947_v15 = vsel %vm872_vm14, %v2195_v17, %v799_v11  ;;  %v650_v39 = vsel %vm575_vm0, %v2164_v60, 0.0  ;;  %vm871_vm2 = vcmp.eq.s32.totalorder %v2045_v42, %v2203_v19 }
  0x7e   : > { %vm1019_vm6 = vcmp.eq.s32.totalorder %v2045_v42, %v2210_v26  ;;  %v1095_v41 = vsel %vm1020_vm15, %v2239_v59, %v947_v15  ;;  %v798_v37 = vsel %vm723_vm1, %v2176_v6, %v650_v39  ;;  %vm574_vm3 = vcmp.eq.s32.totalorder %v2045_v42, %v2192_v16 }
  0x7f   : > { %vm722_vm4 = vcmp.eq.s32.totalorder %v2045_v42, %v2215_v28  ;;  %1142 = vmatpush1.msra.mxu0 %v1095_v41  ;;  %v946_v14 = vsel %vm871_vm2, %v2189_v13, %v798_v37  ;;  %v649_v24 = vsel %vm574_vm3, %v2179_v7, 0.0  ;;  %vm870_vm5 = vcmp.eq.s32.totalorder %v2045_v42, %v2223_v31 }
  0x80   : > { %vm1018_vm7 = vcmp.eq.s32.totalorder %v2045_v42, %v2231_v32  ;;  %v1094_v30 = vsel %vm1019_vm6, %v2206_v20, %v946_v14  ;;  %v797_v38 = vsel %vm722_vm4, %v2182_v8, %v649_v24  ;;  %vm573_vm8 = vcmp.eq.s32.totalorder %v2048_v43, %v2186_v9 }
  0x81   : > { %vm721_vm9 = vcmp.eq.s32.totalorder %v2048_v43, %v2200_v12  ;;  %1143 = vmatprep.subr.mxu0 %v1094_v30  ;;  %v945_v45 = vsel %vm870_vm5, %v2195_v17, %v797_v38  ;;  %v648_v40 = vsel %vm573_vm8, %v2164_v60, 0.0  ;;  %vm869_vm10 = vcmp.eq.s32.totalorder %v2048_v43, %v2203_v19 }
  0x82   : > { %vm1017_vm11 = vcmp.eq.s32.totalorder %v2048_v43, %v2210_v26  ;;  %v1093_v42 = vsel %vm1018_vm7, %v2239_v59, %v945_v45  ;;  %v796_v50 = vsel %vm721_vm9, %v2176_v6, %v648_v40  ;;  %vm572_vm12 = vcmp.eq.s32.totalorder %v2048_v43, %v2192_v16 }
  0x83   : > { %vm720_vm13 = vcmp.eq.s32.totalorder %v2048_v43, %v2215_v28  ;;  %1144 = vmatpush1.msra.mxu0 %v1093_v42  ;;  %v944_v51 = vsel %vm869_vm10, %v2189_v13, %v796_v50  ;;  %v647_v5 = vsel %vm572_vm12, %v2179_v7, 0.0  ;;  %vm868_vm14 = vcmp.eq.s32.totalorder %v2048_v43, %v2223_v31 }
  0x84   : > { %vm1016_vm15 = vcmp.eq.s32.totalorder %v2048_v43, %v2231_v32  ;;  %v1092_v10 = vsel %vm1017_vm11, %v2206_v20, %v944_v51  ;;  %v795_v11 = vsel %vm720_vm13, %v2182_v8, %v647_v5  ;;  %vm571_vm0 = vcmp.eq.s32.totalorder %v2051_v44, %v2186_v9 }
  0x85   : > { %vm719_vm1 = vcmp.eq.s32.totalorder %v2051_v44, %v2200_v12  ;;  %1145 = vmatprep.subr.mxu0 %v1092_v10  ;;  %v943_v15 = vsel %vm868_vm14, %v2195_v17, %v795_v11  ;;  %v646_v39 = vsel %vm571_vm0, %v2164_v60, 0.0  ;;  %vm867_vm2 = vcmp.eq.s32.totalorder %v2051_v44, %v2203_v19 }
  0x86   : > { %vm1015_vm6 = vcmp.eq.s32.totalorder %v2051_v44, %v2210_v26  ;;  %v1091_v43 = vsel %vm1016_vm15, %v2239_v59, %v943_v15  ;;  %v794_v41 = vsel %vm719_vm1, %v2176_v6, %v646_v39  ;;  %vm570_vm3 = vcmp.eq.s32.totalorder %v2051_v44, %v2192_v16 }
  0x87   : > { %vm718_vm4 = vcmp.eq.s32.totalorder %v2051_v44, %v2215_v28  ;;  %1146 = vmatpush1.msra.mxu0 %v1091_v43  ;;  %v942_v37 = vsel %vm867_vm2, %v2189_v13, %v794_v41  ;;  %v645_v14 = vsel %vm570_vm3, %v2179_v7, 0.0  ;;  %vm866_vm5 = vcmp.eq.s32.totalorder %v2051_v44, %v2223_v31 }
  0x88   : > { %vm1014_vm7 = vcmp.eq.s32.totalorder %v2051_v44, %v2231_v32  ;;  %v1090_v24 = vsel %vm1015_vm6, %v2206_v20, %v942_v37  ;;  %v793_v30 = vsel %vm718_vm4, %v2182_v8, %v645_v14  ;;  %vm569_vm8 = vcmp.eq.s32.totalorder %v2054_v46, %v2186_v9 }
  0x89   : > { %vm717_vm9 = vcmp.eq.s32.totalorder %v2054_v46, %v2200_v12  ;;  %1147 = vmatprep.subr.mxu0 %v1090_v24  ;;  %v941_v38 = vsel %vm866_vm5, %v2195_v17, %v793_v30  ;;  %v644_v45 = vsel %vm569_vm8, %v2164_v60, 0.0  ;;  %vm865_vm10 = vcmp.eq.s32.totalorder %v2054_v46, %v2203_v19 }
  0x8a   : > { %vm1013_vm11 = vcmp.eq.s32.totalorder %v2054_v46, %v2210_v26  ;;  %v1089_v44 = vsel %vm1014_vm7, %v2239_v59, %v941_v38  ;;  %v792_v40 = vsel %vm717_vm9, %v2176_v6, %v644_v45  ;;  %vm568_vm12 = vcmp.eq.s32.totalorder %v2054_v46, %v2192_v16 }
  0x8b   : > { %vm716_vm13 = vcmp.eq.s32.totalorder %v2054_v46, %v2215_v28  ;;  %1148 = vmatpush1.msra.mxu0 %v1089_v44  ;;  %v940_v42 = vsel %vm865_vm10, %v2189_v13, %v792_v40  ;;  %v643_v50 = vsel %vm568_vm12, %v2179_v7, 0.0  ;;  %vm864_vm14 = vcmp.eq.s32.totalorder %v2054_v46, %v2223_v31 }
  0x8c   : > { %vm1012_vm15 = vcmp.eq.s32.totalorder %v2054_v46, %v2231_v32  ;;  %v1088_v51 = vsel %vm1013_vm11, %v2206_v20, %v940_v42  ;;  %v791_v5 = vsel %vm716_vm13, %v2182_v8, %v643_v50  ;;  %vm567_vm0 = vcmp.eq.s32.totalorder %v2057_v47, %v2186_v9 }
  0x8d   : > { %vm715_vm1 = vcmp.eq.s32.totalorder %v2057_v47, %v2200_v12  ;;  %1149 = vmatprep.subr.mxu0 %v1088_v51  ;;  %v939_v10 = vsel %vm864_vm14, %v2195_v17, %v791_v5  ;;  %v642_v11 = vsel %vm567_vm0, %v2164_v60, 0.0  ;;  %vm863_vm2 = vcmp.eq.s32.totalorder %v2057_v47, %v2203_v19 }
  0x8e   : > { %vm1011_vm6 = vcmp.eq.s32.totalorder %v2057_v47, %v2210_v26  ;;  %v1087_v46 = vsel %vm1012_vm15, %v2239_v59, %v939_v10  ;;  %v790_v15 = vsel %vm715_vm1, %v2176_v6, %v642_v11  ;;  %vm566_vm3 = vcmp.eq.s32.totalorder %v2057_v47, %v2192_v16 }
  0x8f   : > { %vm714_vm4 = vcmp.eq.s32.totalorder %v2057_v47, %v2215_v28  ;;  %1150 = vmatpush1.msra.mxu0 %v1087_v46  ;;  %v938_v39 = vsel %vm863_vm2, %v2189_v13, %v790_v15  ;;  %v641_v43 = vsel %vm566_vm3, %v2179_v7, 0.0  ;;  %vm862_vm5 = vcmp.eq.s32.totalorder %v2057_v47, %v2223_v31 }
  0x90   : > { %vm1010_vm7 = vcmp.eq.s32.totalorder %v2057_v47, %v2231_v32  ;;  %v1086_v41 = vsel %vm1011_vm6, %v2206_v20, %v938_v39  ;;  %v789_v37 = vsel %vm714_vm4, %v2182_v8, %v641_v43  ;;  %vm565_vm8 = vcmp.eq.s32.totalorder %v2060_v48, %v2186_v9 }
  0x91   : > { %vm713_vm9 = vcmp.eq.s32.totalorder %v2060_v48, %v2200_v12  ;;  %1151 = vmatprep.subr.mxu0 %v1086_v41  ;;  %v937_v14 = vsel %vm862_vm5, %v2195_v17, %v789_v37  ;;  %v640_v24 = vsel %vm565_vm8, %v2164_v60, 0.0  ;;  %vm861_vm10 = vcmp.eq.s32.totalorder %v2060_v48, %v2203_v19 }
  0x92   : > { %vm1009_vm11 = vcmp.eq.s32.totalorder %v2060_v48, %v2210_v26  ;;  %v1085_v47 = vsel %vm1010_vm7, %v2239_v59, %v937_v14  ;;  %v788_v30 = vsel %vm713_vm9, %v2176_v6, %v640_v24  ;;  %vm564_vm12 = vcmp.eq.s32.totalorder %v2060_v48, %v2192_v16 }
  0x93   : > { %vm712_vm13 = vcmp.eq.s32.totalorder %v2060_v48, %v2215_v28  ;;  %1152 = vmatpush1.msra.mxu0 %v1085_v47  ;;  %v936_v38 = vsel %vm861_vm10, %v2189_v13, %v788_v30  ;;  %v639_v45 = vsel %vm564_vm12, %v2179_v7, 0.0  ;;  %vm860_vm14 = vcmp.eq.s32.totalorder %v2060_v48, %v2223_v31 }
  0x94   : > { %vm1008_vm15 = vcmp.eq.s32.totalorder %v2060_v48, %v2231_v32  ;;  %v1084_v44 = vsel %vm1009_vm11, %v2206_v20, %v936_v38  ;;  %v787_v40 = vsel %vm712_vm13, %v2182_v8, %v639_v45  ;;  %vm563_vm0 = vcmp.eq.s32.totalorder %v2063_v49, %v2186_v9 }
  0x95   : > { %vm711_vm1 = vcmp.eq.s32.totalorder %v2063_v49, %v2200_v12  ;;  %1153 = vmatprep.subr.mxu0 %v1084_v44  ;;  %v935_v42 = vsel %vm860_vm14, %v2195_v17, %v787_v40  ;;  %v638_v50 = vsel %vm563_vm0, %v2164_v60, 0.0  ;;  %vm859_vm2 = vcmp.eq.s32.totalorder %v2063_v49, %v2203_v19 }
  0x96   : > { %vm1007_vm6 = vcmp.eq.s32.totalorder %v2063_v49, %v2210_v26  ;;  %v1083_v48 = vsel %vm1008_vm15, %v2239_v59, %v935_v42  ;;  %v786_v51 = vsel %vm711_vm1, %v2176_v6, %v638_v50  ;;  %vm562_vm3 = vcmp.eq.s32.totalorder %v2063_v49, %v2192_v16 }
  0x97   : > { %vm710_vm4 = vcmp.eq.s32.totalorder %v2063_v49, %v2215_v28  ;;  %1154 = vmatpush1.msra.mxu0 %v1083_v48  ;;  %v934_v5 = vsel %vm859_vm2, %v2189_v13, %v786_v51  ;;  %v637_v10 = vsel %vm562_vm3, %v2179_v7, 0.0  ;;  %vm858_vm5 = vcmp.eq.s32.totalorder %v2063_v49, %v2223_v31 }
  0x98   : > { %vm1006_vm7 = vcmp.eq.s32.totalorder %v2063_v49, %v2231_v32  ;;  %v1082_v11 = vsel %vm1007_vm6, %v2206_v20, %v934_v5  ;;  %v785_v46 = vsel %vm710_vm4, %v2182_v8, %v637_v10  ;;  %vm561_vm8 = vcmp.eq.s32.totalorder %v2066_v52, %v2186_v9 }
  0x99   : > { %vm709_vm9 = vcmp.eq.s32.totalorder %v2066_v52, %v2200_v12  ;;  %1155 = vmatprep.subr.mxu0 %v1082_v11  ;;  %v933_v15 = vsel %vm858_vm5, %v2195_v17, %v785_v46  ;;  %v636_v39 = vsel %vm561_vm8, %v2164_v60, 0.0  ;;  %vm857_vm10 = vcmp.eq.s32.totalorder %v2066_v52, %v2203_v19 }
  0x9a   : > { %vm1005_vm11 = vcmp.eq.s32.totalorder %v2066_v52, %v2210_v26  ;;  %v1081_v49 = vsel %vm1006_vm7, %v2239_v59, %v933_v15  ;;  %v784_v43 = vsel %vm709_vm9, %v2176_v6, %v636_v39  ;;  %vm560_vm12 = vcmp.eq.s32.totalorder %v2066_v52, %v2192_v16 }
  0x9b   : > { %vm708_vm13 = vcmp.eq.s32.totalorder %v2066_v52, %v2215_v28  ;;  %1156 = vmatpush1.msra.mxu0 %v1081_v49  ;;  %v932_v41 = vsel %vm857_vm10, %v2189_v13, %v784_v43  ;;  %v635_v37 = vsel %vm560_vm12, %v2179_v7, 0.0  ;;  %vm856_vm14 = vcmp.eq.s32.totalorder %v2066_v52, %v2223_v31 }
  0x9c   : > { %vm1004_vm15 = vcmp.eq.s32.totalorder %v2066_v52, %v2231_v32  ;;  %v1080_v14 = vsel %vm1005_vm11, %v2206_v20, %v932_v41  ;;  %v783_v24 = vsel %vm708_vm13, %v2182_v8, %v635_v37  ;;  %vm559_vm0 = vcmp.eq.s32.totalorder %v2069_v53, %v2186_v9 }
  0x9d   : > { %vm707_vm1 = vcmp.eq.s32.totalorder %v2069_v53, %v2200_v12  ;;  %1157 = vmatprep.subr.mxu0 %v1080_v14  ;;  %v931_v47 = vsel %vm856_vm14, %v2195_v17, %v783_v24  ;;  %v634_v30 = vsel %vm559_vm0, %v2164_v60, 0.0  ;;  %vm855_vm2 = vcmp.eq.s32.totalorder %v2069_v53, %v2203_v19 }
  0x9e   : > { %vm1003_vm6 = vcmp.eq.s32.totalorder %v2069_v53, %v2210_v26  ;;  %v1079_v52 = vsel %vm1004_vm15, %v2239_v59, %v931_v47  ;;  %v782_v38 = vsel %vm707_vm1, %v2176_v6, %v634_v30  ;;  %vm558_vm3 = vcmp.eq.s32.totalorder %v2069_v53, %v2192_v16 }
  0x9f   : > { %vm706_vm4 = vcmp.eq.s32.totalorder %v2069_v53, %v2215_v28  ;;  %1158 = vmatpush1.msra.mxu0 %v1079_v52  ;;  %v930_v45 = vsel %vm855_vm2, %v2189_v13, %v782_v38  ;;  %v633_v44 = vsel %vm558_vm3, %v2179_v7, 0.0  ;;  %vm854_vm5 = vcmp.eq.s32.totalorder %v2069_v53, %v2223_v31 }
  0xa0   : > { %vm1002_vm7 = vcmp.eq.s32.totalorder %v2069_v53, %v2231_v32  ;;  %v1078_v40 = vsel %vm1003_vm6, %v2206_v20, %v930_v45  ;;  %v781_v42 = vsel %vm706_vm4, %v2182_v8, %v633_v44  ;;  %vm557_vm8 = vcmp.eq.s32.totalorder %v2072_v54, %v2186_v9 }
  0xa1   : > { %vm705_vm9 = vcmp.eq.s32.totalorder %v2072_v54, %v2200_v12  ;;  %1159 = vmatprep.subr.mxu0 %v1078_v40  ;;  %v929_v50 = vsel %vm854_vm5, %v2195_v17, %v781_v42  ;;  %v632_v48 = vsel %vm557_vm8, %v2164_v60, 0.0  ;;  %vm853_vm10 = vcmp.eq.s32.totalorder %v2072_v54, %v2203_v19 }
  0xa2   : > { %vm1001_vm11 = vcmp.eq.s32.totalorder %v2072_v54, %v2210_v26  ;;  %v1077_v53 = vsel %vm1002_vm7, %v2239_v59, %v929_v50  ;;  %v780_v51 = vsel %vm705_vm9, %v2176_v6, %v632_v48  ;;  %vm556_vm12 = vcmp.eq.s32.totalorder %v2072_v54, %v2192_v16 }
  0xa3   : > { %vm704_vm13 = vcmp.eq.s32.totalorder %v2072_v54, %v2215_v28  ;;  %1160 = vmatpush1.msra.mxu0 %v1077_v53  ;;  %v928_v5 = vsel %vm853_vm10, %v2189_v13, %v780_v51  ;;  %v631_v10 = vsel %vm556_vm12, %v2179_v7, 0.0  ;;  %vm852_vm14 = vcmp.eq.s32.totalorder %v2072_v54, %v2223_v31 }
  0xa4   : > { %vm1000_vm15 = vcmp.eq.s32.totalorder %v2072_v54, %v2231_v32  ;;  %v1076_v11 = vsel %vm1001_vm11, %v2206_v20, %v928_v5  ;;  %v779_v46 = vsel %vm704_vm13, %v2182_v8, %v631_v10  ;;  %vm555_vm0 = vcmp.eq.s32.totalorder %v2075_v55, %v2186_v9 }
  0xa5   : > { %vm703_vm1 = vcmp.eq.s32.totalorder %v2075_v55, %v2200_v12  ;;  %1161 = vmatprep.subr.mxu0 %v1076_v11  ;;  %v927_v15 = vsel %vm852_vm14, %v2195_v17, %v779_v46  ;;  %v630_v39 = vsel %vm555_vm0, %v2164_v60, 0.0  ;;  %vm851_vm2 = vcmp.eq.s32.totalorder %v2075_v55, %v2203_v19 }
  0xa6   : > { %vm999_vm6 = vcmp.eq.s32.totalorder %v2075_v55, %v2210_v26  ;;  %v1075_v54 = vsel %vm1000_vm15, %v2239_v59, %v927_v15  ;;  %v778_v49 = vsel %vm703_vm1, %v2176_v6, %v630_v39  ;;  %vm554_vm3 = vcmp.eq.s32.totalorder %v2075_v55, %v2192_v16 }
  0xa7   : > { %vm702_vm4 = vcmp.eq.s32.totalorder %v2075_v55, %v2215_v28  ;;  %1162 = vmatpush1.msra.mxu0 %v1075_v54  ;;  %v926_v43 = vsel %vm851_vm2, %v2189_v13, %v778_v49  ;;  %v629_v41 = vsel %vm554_vm3, %v2179_v7, 0.0  ;;  %vm850_vm5 = vcmp.eq.s32.totalorder %v2075_v55, %v2223_v31 }
  0xa8   : > { %vm998_vm7 = vcmp.eq.s32.totalorder %v2075_v55, %v2231_v32  ;;  %v1074_v37 = vsel %vm999_vm6, %v2206_v20, %v926_v43  ;;  %v777_v14 = vsel %vm702_vm4, %v2182_v8, %v629_v41  ;;  %vm553_vm8 = vcmp.eq.s32.totalorder %v2078_v56, %v2186_v9 }
  0xa9   : > { %vm701_vm9 = vcmp.eq.s32.totalorder %v2078_v56, %v2200_v12  ;;  %1163 = vmatprep.subr.mxu0 %v1074_v37  ;;  %v925_v24 = vsel %vm850_vm5, %v2195_v17, %v777_v14  ;;  %v628_v47 = vsel %vm553_vm8, %v2164_v60, 0.0  ;;  %vm849_vm10 = vcmp.eq.s32.totalorder %v2078_v56, %v2203_v19 }
  0xaa   : > { %vm997_vm11 = vcmp.eq.s32.totalorder %v2078_v56, %v2210_v26  ;;  %v1073_v55 = vsel %vm998_vm7, %v2239_v59, %v925_v24  ;;  %v776_v30 = vsel %vm701_vm9, %v2176_v6, %v628_v47  ;;  %vm552_vm12 = vcmp.eq.s32.totalorder %v2078_v56, %v2192_v16 }
  0xab   : > { %vm700_vm13 = vcmp.eq.s32.totalorder %v2078_v56, %v2215_v28  ;;  %1164 = vmatpush1.msra.mxu0 %v1073_v55  ;;  %v924_v52 = vsel %vm849_vm10, %v2189_v13, %v776_v30  ;;  %v627_v38 = vsel %vm552_vm12, %v2179_v7, 0.0  ;;  %vm848_vm14 = vcmp.eq.s32.totalorder %v2078_v56, %v2223_v31 }
  0xac   : > { %vm996_vm15 = vcmp.eq.s32.totalorder %v2078_v56, %v2231_v32  ;;  %v1072_v45 = vsel %vm997_vm11, %v2206_v20, %v924_v52  ;;  %v775_v44 = vsel %vm700_vm13, %v2182_v8, %v627_v38  ;;  %vm551_vm0 = vcmp.eq.s32.totalorder %v2027_v34, %v2186_v9 }
  0xad   : > { %vm699_vm1 = vcmp.eq.s32.totalorder %v2027_v34, %v2200_v12  ;;  %1165 = vmatprep.subr.mxu0 %v1072_v45  ;;  %v923_v40 = vsel %vm848_vm14, %v2195_v17, %v775_v44  ;;  %v626_v42 = vsel %vm551_vm0, %v2164_v60, 0.0  ;;  %vm847_vm2 = vcmp.eq.s32.totalorder %v2027_v34, %v2203_v19 }
  0xae   : > { %vm995_vm6 = vcmp.eq.s32.totalorder %v2027_v34, %v2210_v26  ;;  %v1071_v56 = vsel %vm996_vm15, %v2239_v59, %v923_v40  ;;  %v774_v50 = vsel %vm699_vm1, %v2176_v6, %v626_v42  ;;  %vm550_vm3 = vcmp.eq.s32.totalorder %v2027_v34, %v2192_v16 }
  0xaf   : > { %vm698_vm4 = vcmp.eq.s32.totalorder %v2027_v34, %v2215_v28  ;;  %1166 = vmatpush1.msra.mxu0 %v1071_v56  ;;  %v922_v48 = vsel %vm847_vm2, %v2189_v13, %v774_v50  ;;  %v625_v53 = vsel %vm550_vm3, %v2179_v7, 0.0  ;;  %vm846_vm5 = vcmp.eq.s32.totalorder %v2027_v34, %v2223_v31 }
  0xb0   : > { %vm994_vm7 = vcmp.eq.s32.totalorder %v2027_v34, %v2231_v32  ;;  %v1070_v51 = vsel %vm995_vm6, %v2206_v20, %v922_v48  ;;  %v773_v5 = vsel %vm698_vm4, %v2182_v8, %v625_v53  ;;  %vm613_vm8 = vcmp.eq.s32.totalorder %v2081_v57, %v2186_v9 }
  0xb1   : > { %vm761_vm9 = vcmp.eq.s32.totalorder %v2081_v57, %v2200_v12  ;;  %1167 = vmatprep.subr.mxu0 %v1070_v51  ;;  %v921_v10 = vsel %vm846_vm5, %v2195_v17, %v773_v5  ;;  %v688_v11 = vsel %vm613_vm8, %v2164_v60, 0.0  ;;  %vm909_vm10 = vcmp.eq.s32.totalorder %v2081_v57, %v2203_v19 }
  0xb2   : > { %vm1057_vm11 = vcmp.eq.s32.totalorder %v2081_v57, %v2210_v26  ;;  %v1069_v34 = vsel %vm994_vm7, %v2239_v59, %v921_v10  ;;  %v836_v46 = vsel %vm761_vm9, %v2176_v6, %v688_v11  ;;  %vm612_vm12 = vcmp.eq.s32.totalorder %v2081_v57, %v2192_v16 }
  0xb3   : > { %vm760_vm13 = vcmp.eq.s32.totalorder %v2081_v57, %v2215_v28  ;;  %1168 = vmatpush1.msra.mxu0 %v1069_v34  ;;  %v984_v15 = vsel %vm909_vm10, %v2189_v13, %v836_v46  ;;  %v687_v39 = vsel %vm612_vm12, %v2179_v7, 0.0  ;;  %vm908_vm14 = vcmp.eq.s32.totalorder %v2081_v57, %v2223_v31 }
  0xb4   : > { %vm1056_vm15 = vcmp.eq.s32.totalorder %v2081_v57, %v2231_v32  ;;  %v1132_v54 = vsel %vm1057_vm11, %v2206_v20, %v984_v15  ;;  %v835_v49 = vsel %vm760_vm13, %v2182_v8, %v687_v39  ;;  %vm611_vm0 = vcmp.eq.s32.totalorder %v2084_v62, %v2186_v9 }
  0xb5   : > { %vm759_vm1 = vcmp.eq.s32.totalorder %v2084_v62, %v2200_v12  ;;  %1169 = vmatprep.subr.mxu0 %v1132_v54  ;;  %v983_v43 = vsel %vm908_vm14, %v2195_v17, %v835_v49  ;;  %v686_v41 = vsel %vm611_vm0, %v2164_v60, 0.0  ;;  %vm907_vm2 = vcmp.eq.s32.totalorder %v2084_v62, %v2203_v19 }
  0xb6   : > { %vm1055_vm6 = vcmp.eq.s32.totalorder %v2084_v62, %v2210_v26  ;;  %v1131_v57 = vsel %vm1056_vm15, %v2239_v59, %v983_v43  ;;  %v834_v37 = vsel %vm759_vm1, %v2176_v6, %v686_v41  ;;  %vm610_vm3 = vcmp.eq.s32.totalorder %v2084_v62, %v2192_v16 }
  0xb7   : > { %vm758_vm4 = vcmp.eq.s32.totalorder %v2084_v62, %v2215_v28  ;;  %1170 = vmatpush2.msra.mxu0 %v1131_v57  ;;  %v982_v14 = vsel %vm907_vm2, %v2189_v13, %v834_v37  ;;  %v685_v24 = vsel %vm610_vm3, %v2179_v7, 0.0  ;;  %vm906_vm5 = vcmp.eq.s32.totalorder %v2084_v62, %v2223_v31 }
  0xb8   : > { %vm1054_vm7 = vcmp.eq.s32.totalorder %v2084_v62, %v2231_v32  ;;  %v1130_v47 = vsel %vm1055_vm6, %v2206_v20, %v982_v14  ;;  %v833_v55 = vsel %vm758_vm4, %v2182_v8, %v685_v24  ;;  %vm609_vm8 = vcmp.eq.s32.totalorder %v2087_v63, %v2186_v9 }
  0xb9   : > { %vm757_vm9 = vcmp.eq.s32.totalorder %v2087_v63, %v2200_v12  ;;  %1171 = vmatprep.subr.mxu0 %v1130_v47  ;;  %v981_v30 = vsel %vm906_vm5, %v2195_v17, %v833_v55  ;;  %v684_v52 = vsel %vm609_vm8, %v2164_v60, 0.0  ;;  %vm905_vm10 = vcmp.eq.s32.totalorder %v2087_v63, %v2203_v19 }
  0xba   : > { %vm1053_vm11 = vcmp.eq.s32.totalorder %v2087_v63, %v2210_v26  ;;  %v1129_v62 = vsel %vm1054_vm7, %v2239_v59, %v981_v30  ;;  %v832_v38 = vsel %vm757_vm9, %v2176_v6, %v684_v52  ;;  %vm608_vm12 = vcmp.eq.s32.totalorder %v2087_v63, %v2192_v16 }
  0xbb   : > { %vm756_vm13 = vcmp.eq.s32.totalorder %v2087_v63, %v2215_v28  ;;  %1172 = vmatpush2.msra.mxu0 %v1129_v62  ;;  %v980_v45 = vsel %vm905_vm10, %v2189_v13, %v832_v38  ;;  %v683_v44 = vsel %vm608_vm12, %v2179_v7, 0.0  ;;  %vm904_vm14 = vcmp.eq.s32.totalorder %v2087_v63, %v2223_v31 }
  0xbc   : > { %vm1052_vm15 = vcmp.eq.s32.totalorder %v2087_v63, %v2231_v32  ;;  %v1128_v40 = vsel %vm1053_vm11, %v2206_v20, %v980_v45  ;;  %v831_v42 = vsel %vm756_vm13, %v2182_v8, %v683_v44  ;;  %vm607_vm0 = vcmp.eq.s32.totalorder %v2090_v0, %v2186_v9 }
  0xbd   : > { %vm755_vm1 = vcmp.eq.s32.totalorder %v2090_v0, %v2200_v12  ;;  %1173 = vmatprep.subr.mxu0 %v1128_v40  ;;  %v979_v56 = vsel %vm904_vm14, %v2195_v17, %v831_v42  ;;  %v682_v50 = vsel %vm607_vm0, %v2164_v60, 0.0  ;;  %vm903_vm2 = vcmp.eq.s32.totalorder %v2090_v0, %v2203_v19 }
  0xbe   : > { %vm1051_vm6 = vcmp.eq.s32.totalorder %v2090_v0, %v2210_v26  ;;  %v1127_v63 = vsel %vm1052_vm15, %v2239_v59, %v979_v56  ;;  %v830_v48 = vsel %vm755_vm1, %v2176_v6, %v682_v50  ;;  %vm606_vm3 = vcmp.eq.s32.totalorder %v2090_v0, %v2192_v16 }
  0xbf   : > { %vm754_vm4 = vcmp.eq.s32.totalorder %v2090_v0, %v2215_v28  ;;  %1174 = vmatpush2.msra.mxu0 %v1127_v63  ;;  %v978_v53 = vsel %vm903_vm2, %v2189_v13, %v830_v48  ;;  %v681_v51 = vsel %vm606_vm3, %v2179_v7, 0.0  ;;  %vm902_vm5 = vcmp.eq.s32.totalorder %v2090_v0, %v2223_v31 }
  0xc0   : > { %vm1050_vm7 = vcmp.eq.s32.totalorder %v2090_v0, %v2231_v32  ;;  %v1126_v5 = vsel %vm1051_vm6, %v2206_v20, %v978_v53  ;;  %v829_v10 = vsel %vm754_vm4, %v2182_v8, %v681_v51  ;;  %vm605_vm8 = vcmp.eq.s32.totalorder %v2093_v1, %v2186_v9 }
  0xc1   : > { %vm753_vm9 = vcmp.eq.s32.totalorder %v2093_v1, %v2200_v12  ;;  %1175 = vmatprep.subr.mxu0 %v1126_v5  ;;  %v977_v11 = vsel %vm902_vm5, %v2195_v17, %v829_v10  ;;  %v680_v34 = vsel %vm605_vm8, %v2164_v60, 0.0  ;;  %vm901_vm10 = vcmp.eq.s32.totalorder %v2093_v1, %v2203_v19 }
  0xc2   : > { %vm1049_vm11 = vcmp.eq.s32.totalorder %v2093_v1, %v2210_v26  ;;  %v1125_v0 = vsel %vm1050_vm7, %v2239_v59, %v977_v11  ;;  %v828_v46 = vsel %vm753_vm9, %v2176_v6, %v680_v34  ;;  %vm604_vm12 = vcmp.eq.s32.totalorder %v2093_v1, %v2192_v16 }
  0xc3   : > { %vm752_vm13 = vcmp.eq.s32.totalorder %v2093_v1, %v2215_v28  ;;  %1176 = vmatpush2.msra.mxu0 %v1125_v0  ;;  %v976_v15 = vsel %vm901_vm10, %v2189_v13, %v828_v46  ;;  %v679_v39 = vsel %vm604_vm12, %v2179_v7, 0.0  ;;  %vm900_vm14 = vcmp.eq.s32.totalorder %v2093_v1, %v2223_v31 }
  0xc4   : > { %vm1048_vm15 = vcmp.eq.s32.totalorder %v2093_v1, %v2231_v32  ;;  %v1124_v54 = vsel %vm1049_vm11, %v2206_v20, %v976_v15  ;;  %v827_v49 = vsel %vm752_vm13, %v2182_v8, %v679_v39  ;;  %vm603_vm0 = vcmp.eq.s32.totalorder %v2115_v18, %v2186_v9 }
  0xc5   : > { %vm751_vm1 = vcmp.eq.s32.totalorder %v2115_v18, %v2200_v12  ;;  %1177 = vmatprep.subr.mxu0 %v1124_v54  ;;  %v975_v43 = vsel %vm900_vm14, %v2195_v17, %v827_v49  ;;  %v678_v41 = vsel %vm603_vm0, %v2164_v60, 0.0  ;;  %vm899_vm2 = vcmp.eq.s32.totalorder %v2115_v18, %v2203_v19 }
  0xc6   : > { %vm1047_vm6 = vcmp.eq.s32.totalorder %v2115_v18, %v2210_v26  ;;  %v1123_v1 = vsel %vm1048_vm15, %v2239_v59, %v975_v43  ;;  %v826_v57 = vsel %vm751_vm1, %v2176_v6, %v678_v41  ;;  %vm602_vm3 = vcmp.eq.s32.totalorder %v2115_v18, %v2192_v16 }
  0xc7   : > { %vm750_vm4 = vcmp.eq.s32.totalorder %v2115_v18, %v2215_v28  ;;  %1178 = vmatpush2.msra.mxu0 %v1123_v1  ;;  %v974_v37 = vsel %vm899_vm2, %v2189_v13, %v826_v57  ;;  %v677_v14 = vsel %vm602_vm3, %v2179_v7, 0.0  ;;  %vm898_vm5 = vcmp.eq.s32.totalorder %v2115_v18, %v2223_v31 }
  0xc8   : > { %vm1046_vm7 = vcmp.eq.s32.totalorder %v2115_v18, %v2231_v32  ;;  %v1122_v24 = vsel %vm1047_vm6, %v2206_v20, %v974_v37  ;;  %v825_v47 = vsel %vm750_vm4, %v2182_v8, %v677_v14  ;;  %vm601_vm8 = vcmp.eq.s32.totalorder %v2120_v21, %v2186_v9 }
  0xc9   : > { %vm749_vm9 = vcmp.eq.s32.totalorder %v2120_v21, %v2200_v12  ;;  %1179 = vmatprep.subr.mxu0 %v1122_v24  ;;  %v973_v55 = vsel %vm898_vm5, %v2195_v17, %v825_v47  ;;  %v676_v30 = vsel %vm601_vm8, %v2164_v60, 0.0  ;;  %vm897_vm10 = vcmp.eq.s32.totalorder %v2120_v21, %v2203_v19 }
  0xca   : > { %vm1045_vm11 = vcmp.eq.s32.totalorder %v2120_v21, %v2210_v26  ;;  %v1121_v18 = vsel %vm1046_vm7, %v2239_v59, %v973_v55  ;;  %v824_v52 = vsel %vm749_vm9, %v2176_v6, %v676_v30  ;;  %vm600_vm12 = vcmp.eq.s32.totalorder %v2120_v21, %v2192_v16 }
  0xcb   : > { %vm748_vm13 = vcmp.eq.s32.totalorder %v2120_v21, %v2215_v28  ;;  %1180 = vmatpush2.msra.mxu0 %v1121_v18  ;;  %v972_v62 = vsel %vm897_vm10, %v2189_v13, %v824_v52  ;;  %v675_v38 = vsel %vm600_vm12, %v2179_v7, 0.0  ;;  %vm896_vm14 = vcmp.eq.s32.totalorder %v2120_v21, %v2223_v31 }
  0xcc   : > { %vm1044_vm15 = vcmp.eq.s32.totalorder %v2120_v21, %v2231_v32  ;;  %v1120_v45 = vsel %vm1045_vm11, %v2206_v20, %v972_v62  ;;  %v823_v44 = vsel %vm748_vm13, %v2182_v8, %v675_v38  ;;  %vm599_vm0 = vcmp.eq.s32.totalorder %v2123_v23, %v2186_v9 }
  0xcd   : > { %vm747_vm1 = vcmp.eq.s32.totalorder %v2123_v23, %v2200_v12  ;;  %1181 = vmatprep.subr.mxu0 %v1120_v45  ;;  %v971_v40 = vsel %vm896_vm14, %v2195_v17, %v823_v44  ;;  %v674_v42 = vsel %vm599_vm0, %v2164_v60, 0.0  ;;  %vm895_vm2 = vcmp.eq.s32.totalorder %v2123_v23, %v2203_v19 }
  0xce   : > { %vm1043_vm6 = vcmp.eq.s32.totalorder %v2123_v23, %v2210_v26  ;;  %v1119_v21 = vsel %vm1044_vm15, %v2239_v59, %v971_v40  ;;  %v822_v56 = vsel %vm747_vm1, %v2176_v6, %v674_v42  ;;  %vm598_vm3 = vcmp.eq.s32.totalorder %v2123_v23, %v2192_v16 }
  0xcf   : > { %vm746_vm4 = vcmp.eq.s32.totalorder %v2123_v23, %v2215_v28  ;;  %1182 = vmatpush2.msra.mxu0 %v1119_v21  ;;  %v970_v50 = vsel %vm895_vm2, %v2189_v13, %v822_v56  ;;  %v673_v63 = vsel %vm598_vm3, %v2179_v7, 0.0  ;;  %vm894_vm5 = vcmp.eq.s32.totalorder %v2123_v23, %v2223_v31 }
  0xd0   : > { %vm1042_vm7 = vcmp.eq.s32.totalorder %v2123_v23, %v2231_v32  ;;  %v1118_v48 = vsel %vm1043_vm6, %v2206_v20, %v970_v50  ;;  %v821_v53 = vsel %vm746_vm4, %v2182_v8, %v673_v63  ;;  %vm597_vm8 = vcmp.eq.s32.totalorder %v2132_v27, %v2186_v9 }
  0xd1   : > { %vm745_vm9 = vcmp.eq.s32.totalorder %v2132_v27, %v2200_v12  ;;  %1183 = vmatprep.subr.mxu0 %v1118_v48  ;;  %v969_v51 = vsel %vm894_vm5, %v2195_v17, %v821_v53  ;;  %v672_v5 = vsel %vm597_vm8, %v2164_v60, 0.0  ;;  %vm893_vm10 = vcmp.eq.s32.totalorder %v2132_v27, %v2203_v19 }
  0xd2   : > { %vm1041_vm11 = vcmp.eq.s32.totalorder %v2132_v27, %v2210_v26  ;;  %v1117_v23 = vsel %vm1042_vm7, %v2239_v59, %v969_v51  ;;  %v820_v10 = vsel %vm745_vm9, %v2176_v6, %v672_v5  ;;  %vm596_vm12 = vcmp.eq.s32.totalorder %v2132_v27, %v2192_v16 }
  0xd3   : > { %vm744_vm13 = vcmp.eq.s32.totalorder %v2132_v27, %v2215_v28  ;;  %1184 = vmatpush2.msra.mxu0 %v1117_v23  ;;  %v968_v11 = vsel %vm893_vm10, %v2189_v13, %v820_v10  ;;  %v671_v34 = vsel %vm596_vm12, %v2179_v7, 0.0  ;;  %vm892_vm14 = vcmp.eq.s32.totalorder %v2132_v27, %v2223_v31 }
  0xd4   : > { %vm1040_vm15 = vcmp.eq.s32.totalorder %v2132_v27, %v2231_v32  ;;  %v1116_v0 = vsel %vm1041_vm11, %v2206_v20, %v968_v11  ;;  %v819_v46 = vsel %vm744_vm13, %v2182_v8, %v671_v34  ;;  %vm595_vm0 = vcmp.eq.s32.totalorder %v2135_v22, %v2186_v9 }
  0xd5   : > { %vm743_vm1 = vcmp.eq.s32.totalorder %v2135_v22, %v2200_v12  ;;  %1185 = vmatprep.subr.mxu0 %v1116_v0  ;;  %v967_v15 = vsel %vm892_vm14, %v2195_v17, %v819_v46  ;;  %v670_v39 = vsel %vm595_vm0, %v2164_v60, 0.0  ;;  %vm891_vm2 = vcmp.eq.s32.totalorder %v2135_v22, %v2203_v19 }
  0xd6   : > { %vm1039_vm6 = vcmp.eq.s32.totalorder %v2135_v22, %v2210_v26  ;;  %v1115_v27 = vsel %vm1040_vm15, %v2239_v59, %v967_v15  ;;  %v818_v54 = vsel %vm743_vm1, %v2176_v6, %v670_v39  ;;  %vm594_vm3 = vcmp.eq.s32.totalorder %v2135_v22, %v2192_v16 }
  0xd7   : > { %vm742_vm4 = vcmp.eq.s32.totalorder %v2135_v22, %v2215_v28  ;;  %1186 = vmatpush2.msra.mxu0 %v1115_v27  ;;  %v966_v49 = vsel %vm891_vm2, %v2189_v13, %v818_v54  ;;  %v669_v43 = vsel %vm594_vm3, %v2179_v7, 0.0  ;;  %vm890_vm5 = vcmp.eq.s32.totalorder %v2135_v22, %v2223_v31 }
  0xd8   : > { %vm1038_vm7 = vcmp.eq.s32.totalorder %v2135_v22, %v2231_v32  ;;  %v1114_v41 = vsel %vm1039_vm6, %v2206_v20, %v966_v49  ;;  %v817_v1 = vsel %vm742_vm4, %v2182_v8, %v669_v43  ;;  %vm593_vm8 = vcmp.eq.s32.totalorder %v2145_v33, %v2186_v9 }
  0xd9   : > { %vm741_vm9 = vcmp.eq.s32.totalorder %v2145_v33, %v2200_v12  ;;  %1187 = vmatprep.subr.mxu0 %v1114_v41  ;;  %v965_v57 = vsel %vm890_vm5, %v2195_v17, %v817_v1  ;;  %v668_v37 = vsel %vm593_vm8, %v2164_v60, 0.0  ;;  %vm889_vm10 = vcmp.eq.s32.totalorder %v2145_v33, %v2203_v19 }
  0xda   : > { %vm1037_vm11 = vcmp.eq.s32.totalorder %v2145_v33, %v2210_v26  ;;  %v1113_v22 = vsel %vm1038_vm7, %v2239_v59, %v965_v57  ;;  %v816_v14 = vsel %vm741_vm9, %v2176_v6, %v668_v37  ;;  %vm592_vm12 = vcmp.eq.s32.totalorder %v2145_v33, %v2192_v16 }
  0xdb   : > { %vm740_vm13 = vcmp.eq.s32.totalorder %v2145_v33, %v2215_v28  ;;  %1188 = vmatpush2.msra.mxu0 %v1113_v22  ;;  %v964_v24 = vsel %vm889_vm10, %v2189_v13, %v816_v14  ;;  %v667_v47 = vsel %vm592_vm12, %v2179_v7, 0.0  ;;  %vm888_vm14 = vcmp.eq.s32.totalorder %v2145_v33, %v2223_v31 }
  0xdc   : > { %vm1036_vm15 = vcmp.eq.s32.totalorder %v2145_v33, %v2231_v32  ;;  %v1112_v55 = vsel %vm1037_vm11, %v2206_v20, %v964_v24  ;;  %v815_v30 = vsel %vm740_vm13, %v2182_v8, %v667_v47  ;;  %vm591_vm0 = vcmp.eq.s32.totalorder %v2148_v35, %v2186_v9 }
  0xdd   : > { %vm739_vm1 = vcmp.eq.s32.totalorder %v2148_v35, %v2200_v12  ;;  %1189 = vmatprep.subr.mxu0 %v1112_v55  ;;  %v963_v18 = vsel %vm888_vm14, %v2195_v17, %v815_v30  ;;  %v666_v52 = vsel %vm591_vm0, %v2164_v60, 0.0  ;;  %vm887_vm2 = vcmp.eq.s32.totalorder %v2148_v35, %v2203_v19 }
  0xde   : > { %vm1035_vm6 = vcmp.eq.s32.totalorder %v2148_v35, %v2210_v26  ;;  %v1111_v33 = vsel %vm1036_vm15, %v2239_v59, %v963_v18  ;;  %v814_v62 = vsel %vm739_vm1, %v2176_v6, %v666_v52  ;;  %vm590_vm3 = vcmp.eq.s32.totalorder %v2148_v35, %v2192_v16 }
  0xdf   : > { %vm738_vm4 = vcmp.eq.s32.totalorder %v2148_v35, %v2215_v28  ;;  %1190 = vmatpush2.msra.mxu0 %v1111_v33  ;;  %v962_v38 = vsel %vm887_vm2, %v2189_v13, %v814_v62  ;;  %v665_v45 = vsel %vm590_vm3, %v2179_v7, 0.0  ;;  %vm886_vm5 = vcmp.eq.s32.totalorder %v2148_v35, %v2223_v31 }
  0xe0   : > { %vm1034_vm7 = vcmp.eq.s32.totalorder %v2148_v35, %v2231_v32  ;;  %v1110_v44 = vsel %vm1035_vm6, %v2206_v20, %v962_v38  ;;  %v813_v40 = vsel %vm738_vm4, %v2182_v8, %v665_v45  ;;  %vm589_vm8 = vcmp.eq.s32.totalorder %v2151_v36, %v2186_v9 }
  0xe1   : > { %vm737_vm9 = vcmp.eq.s32.totalorder %v2151_v36, %v2200_v12  ;;  %1191 = vmatprep.subr.mxu0 %v1110_v44  ;;  %v961_v42 = vsel %vm886_vm5, %v2195_v17, %v813_v40  ;;  %v664_v21 = vsel %vm589_vm8, %v2164_v60, 0.0  ;;  %vm885_vm10 = vcmp.eq.s32.totalorder %v2151_v36, %v2203_v19 }
  0xe2   : > { %vm1033_vm11 = vcmp.eq.s32.totalorder %v2151_v36, %v2210_v26  ;;  %v1109_v35 = vsel %vm1034_vm7, %v2239_v59, %v961_v42  ;;  %v812_v56 = vsel %vm737_vm9, %v2176_v6, %v664_v21  ;;  %vm588_vm12 = vcmp.eq.s32.totalorder %v2151_v36, %v2192_v16 }
  0xe3   : > { %vm736_vm13 = vcmp.eq.s32.totalorder %v2151_v36, %v2215_v28  ;;  %1192 = vmatpush2.msra.mxu0 %v1109_v35  ;;  %v960_v50 = vsel %vm885_vm10, %v2189_v13, %v812_v56  ;;  %v663_v63 = vsel %vm588_vm12, %v2179_v7, 0.0  ;;  %vm884_vm14 = vcmp.eq.s32.totalorder %v2151_v36, %v2223_v31 }
  0xe4   : > { %vm1032_vm15 = vcmp.eq.s32.totalorder %v2151_v36, %v2231_v32  ;;  %v1108_v48 = vsel %vm1033_vm11, %v2206_v20, %v960_v50  ;;  %v811_v53 = vsel %vm736_vm13, %v2182_v8, %v663_v63  ;;  %vm587_vm0 = vcmp.eq.s32.totalorder %v2160_v58, %v2186_v9 }
  0xe5   : > { %vm735_vm1 = vcmp.eq.s32.totalorder %v2160_v58, %v2200_v12  ;;  %1193 = vmatprep.subr.mxu0 %v1108_v48  ;;  %v959_v51 = vsel %vm884_vm14, %v2195_v17, %v811_v53  ;;  %v662_v5 = vsel %vm587_vm0, %v2164_v60, 0.0  ;;  %vm883_vm2 = vcmp.eq.s32.totalorder %v2160_v58, %v2203_v19 }
  0xe6   : > { %vm1031_vm6 = vcmp.eq.s32.totalorder %v2160_v58, %v2210_v26  ;;  %v1107_v36 = vsel %vm1032_vm15, %v2239_v59, %v959_v51  ;;  %v810_v23 = vsel %vm735_vm1, %v2176_v6, %v662_v5  ;;  %vm586_vm3 = vcmp.eq.s32.totalorder %v2160_v58, %v2192_v16 }
  0xe7   : > { %vm734_vm4 = vcmp.eq.s32.totalorder %v2160_v58, %v2215_v28  ;;  %1194 = vmatpush2.msra.mxu0 %v1107_v36  ;;  %v958_v10 = vsel %vm883_vm2, %v2189_v13, %v810_v23  ;;  %v661_v11 = vsel %vm586_vm3, %v2179_v7, 0.0  ;;  %vm882_vm5 = vcmp.eq.s32.totalorder %v2160_v58, %v2223_v31 }
  0xe8   : > { %vm1030_vm7 = vcmp.eq.s32.totalorder %v2160_v58, %v2231_v32  ;;  %v1106_v34 = vsel %vm1031_vm6, %v2206_v20, %v958_v10  ;;  %v809_v0 = vsel %vm734_vm4, %v2182_v8, %v661_v11  ;;  %vm585_vm8 = vcmp.eq.s32.totalorder %v2167_v61, %v2186_v9 }
  0xe9   : > { %vm733_vm9 = vcmp.eq.s32.totalorder %v2167_v61, %v2200_v12  ;;  %1195 = vmatprep.subr.mxu0 %v1106_v34  ;;  %v957_v46 = vsel %vm882_vm5, %v2195_v17, %v809_v0  ;;  %v660_v15 = vsel %vm585_vm8, %v2164_v60, 0.0  ;;  %vm881_vm10 = vcmp.eq.s32.totalorder %v2167_v61, %v2203_v19 }
  0xea   : > { %vm1029_vm11 = vcmp.eq.s32.totalorder %v2167_v61, %v2210_v26  ;;  %v1105_v58 = vsel %vm1030_vm7, %v2239_v59, %v957_v46  ;;  %v808_v39 = vsel %vm733_vm9, %v2176_v6, %v660_v15  ;;  %vm584_vm12 = vcmp.eq.s32.totalorder %v2167_v61, %v2192_v16 }
  0xeb   : > { %vm732_vm13 = vcmp.eq.s32.totalorder %v2167_v61, %v2215_v28  ;;  %1196 = vmatpush2.msra.mxu0 %v1105_v58  ;;  %v956_v27 = vsel %vm881_vm10, %v2189_v13, %v808_v39  ;;  %v659_v54 = vsel %vm584_vm12, %v2179_v7, 0.0  ;;  %vm880_vm14 = vcmp.eq.s32.totalorder %v2167_v61, %v2223_v31 }
  0xec   : > { %vm1028_vm15 = vcmp.eq.s32.totalorder %v2167_v61, %v2231_v32  ;;  %v1104_v49 = vsel %vm1029_vm11, %v2206_v20, %v956_v27  ;;  %v807_v43 = vsel %vm732_vm13, %v2182_v8, %v659_v54  ;;  %vm583_vm0 = vcmp.eq.s32.totalorder %v2170_v4, %v2186_v9 }
  0xed   : > { %vm731_vm1 = vcmp.eq.s32.totalorder %v2170_v4, %v2200_v12  ;;  %1197 = vmatprep.subr.mxu0 %v1104_v49  ;;  %v955_v41 = vsel %vm880_vm14, %v2195_v17, %v807_v43  ;;  %v658_v1 = vsel %vm583_vm0, %v2164_v60, 0.0  ;;  %vm879_vm2 = vcmp.eq.s32.totalorder %v2170_v4, %v2203_v19  ;;  %v1135_v19 = vld [vmem:[%s1982_s15] sm:$0xff]  ;;  %s1264_s15 = sshll.u32 %s1851_s14, 4  ;;  %s1265_s15 = int_to_ptr.vmem [resolvable:$true] %s1264_s15 }
  0xee   : > { %vm1027_vm6 = vcmp.eq.s32.totalorder %v2170_v4, %v2210_v26  ;;  %v1103_v61 = vsel %vm1028_vm15, %v2239_v59, %v955_v41  ;;  %v806_v57 = vsel %vm731_vm1, %v2176_v6, %v658_v1  ;;  %vm582_vm3 = vcmp.eq.s32.totalorder %v2170_v4, %v2192_v16  ;;  %s1658_s17 = scalar_lea.vmem %s1265_s15, 32  ;;  %p1665_p1 = scmp.lt.s32.totalorder %s1265_s15, %s1265_s15 }
  0xef   : > { %vm730_vm4 = vcmp.eq.s32.totalorder %v2170_v4, %v2215_v28  ;;  %1198 = vmatpush2.msra.mxu0 %v1103_v61  ;;  %v954_v60 = vsel %vm879_vm2, %v2189_v13, %v806_v57  ;;  %v657_v9 = vsel %vm582_vm3, %v2179_v7, 0.0  ;;  %vm878_vm5 = vcmp.eq.s32.totalorder %v2170_v4, %v2223_v31  ;;  %v1215_v7 = vld [vmem:[#allocation6] sm:$0x3]  ;;  %p1659_p10 = scmp.ne.s32.totalorder %s1265_s15, %s1658_s17  ;;  %p1666_p3 = scmp.lt.s32.totalorder %s1658_s17, %s1658_s17 }
  0xf0   : > { %vm1026_vm7 = vcmp.eq.s32.totalorder %v2170_v4, %v2231_v32  ;;  %v1102_v6 = vsel %vm1027_vm6, %v2206_v20, %v954_v60  ;;  %v805_v16 = vsel %vm730_vm4, %v2182_v8, %v657_v9  ;;  %vm1219_vm8 = vcmp.lt.s32.totalorder %v509_v29, 256 }
  0xf1   : > { %1199 = vmatprep.subr.mxu0 %v1102_v6  ;;  %v953_v12 = vsel %vm878_vm5, %v2195_v17, %v805_v16  ;;  %1222 = vst.msk [vmem:[%s3177_s26] sm:$0x3] %vm1219_vm8, %v2095_v2  ;;  %1223 = vst.msk [vmem:[%s3178_s8] sm:$0x3] %vm1219_vm8, %v2097_v3  ;;  %v1216_v4 = vadd.f32 %v2125_v25, %v1215_v7  ;;  %p1660_p13 = pnand %p1659_p10, %p3180_p11  ;;  %p1667_p5 = por %p1666_p3, %p1665_p1 }
  0xf2   : > { %v1101_v13 = vsel %vm1026_vm7, %v2239_v59, %v953_v12  ;;  %1224 = vst.msk [vmem:[%s3179_s9] sm:$0x3] %vm1219_vm8, %v2125_v25 }
  0xf3   : > { %1200 = vmatpush2.msra.mxu0 %v1101_v13  ;;  %1221 = vst.msk [vmem:[#allocation6] sm:$0x3] %vm1219_vm8, %v1216_v4  ;;  %p1661_p0 = pneg %p1660_p13 }
  0xf4   : > { %1202 = vmatmul.mubr.f32.vlgmr.msra.gmra.mxu0 %v1135_v19 }
  0xf5   : > { %p1668_p6 = pnand %p1667_p5, %p1661_p0 }
  0xf7   : > { %1671 = shalt.err (!%p1668_p6)
}
  0xf8   : > { %p3181_p7 = pmov %p3180_p11  ;;  %v1133_v29 = vld [vmem:[#allocation5] sm:$0xff]  ;;  %s1852_s10 = smov [#allocation5]   ;;  %v1134_v3 = vld [vmem:[#allocation5 + $0x8] sm:$0xff] }
  0xf9   : > { %s1250_s12 = sshll.u32 %s1852_s10, 4  ;;  %s1225_s20 = sand.u32 1, %s1925_s30   ;;  %s1251_s12 = int_to_ptr.vmem [resolvable:$true] %s1250_s12 }
  0xfa   : > { %1556 = dma.vmem_to_hbm [thread:$0]  (%p3181_p7), %s1265_s15, 32, %s3147_s4, [#allocation7]  }
  0xfb   : > { %s1544_s24 = sshll.u32 %s1838_s27, 5  ;;  %s3182_s16 = smov %s3177_s26 }
  0xfc   : > { %s1280_s18 = sshll.u32 %s3182_s16, 4  ;;  %s3183_s2 = smov %s3178_s8  ;;  %s3022_s18 = int_to_ptr.vmem [resolvable:$true] %s1280_s18 }
  0xfd   : > { %s1296_s28 = sshll.u32 %s3183_s2, 4  ;;  %s3184_s25 = smov %s3179_s9  ;;  %s3029_s28 = int_to_ptr.vmem [resolvable:$true] %s1296_s28 }
  0xfe   : > { %s1312_s13 = sshll.u32 %s3184_s25, 4  ;;  %s3020_s26 = scalar_lea.hbm %s3148_s5, %s1544_s24  ;;  %s3036_s13 = int_to_ptr.vmem [resolvable:$true] %s1312_s13 }
  0xff   : > { %s3027_s9 = scalar_lea.hbm %s3149_s6, %s1544_s24  ;;  %s3034_s15 = scalar_lea.hbm %s3150_s7, %s1544_s24 }
 0x100   : > { %s1682_s17 = scalar_lea.vmem %s1251_s12, 256  ;;  %p3185_p12 = pmov %p3181_p7 }
 0x101   : > { %p1683_p9 = scmp.ne.s32.totalorder %s1251_s12, %s1682_s17  ;;  %p1689_p11 = scmp.lt.s32.totalorder %s1251_s12, %s1251_s12 }
 0x102   : > { %p1690_p13 = scmp.lt.s32.totalorder %s1682_s17, %s1682_s17 }
 0x103   : > { %p1684_p2 = pnand %p1683_p9, %p3185_p12 }
 0x104   : > { %p1691_p0 = por %p1690_p13, %p1689_p11 }
 0x105   : > { %p1685_p10 = pneg %p1684_p2 }
 0x107   : > { %p1692_p1 = pnand %p1691_p0, %p1685_p10 }
 0x1b4   : > { %v1203_v2 = vpop.f32.mrf.mxu0 }
 0x1b5   : > { %v1208_v25 = vadd.f32 %v1203_v2, %v1133_v29 }
 0x1b6   : > { %v1205_v8 = vpop.f32.mrf.mxu0 }
 0x1b7   : > { %1210 = vst [vmem:[#allocation5] sm:$0xff] %v1208_v25  ;;  %v1209_v17 = vadd.f32 %v1205_v8, %v1134_v3 }
 0x1b9   : > { %1211 = vst [vmem:[#allocation5 + $0x8] sm:$0xff] %v1209_v17 }
 0x1ba   : > { %1695 = shalt.err (!%p1692_p1)
}
 0x1bb   : > { %p3186_p3 = pmov %p3181_p7  ;;  %s3047_s10 = scalar_lea.sflag [#allocation3], %s1225_s20 }
 0x1bc   : > { %s1706_s24 = scalar_lea.vmem %s3022_s18, 32  ;;  %s1853_s16 = smov [#allocation8]  }
 0x1bd   : > { %1554 = dma.vmem_to_hbm [thread:$0]  (%p3186_p3), %s1251_s12, 256, %s3146_s3, [#allocation3]  }
 0x1be   : > { %p1707_p5 = scmp.ne.s32.totalorder %s3022_s18, %s1706_s24  ;;  %s1710_s2 = sshll.u32 %s1853_s16, 4  ;;  %s1711_s2 = int_to_ptr.vmem [resolvable:$false] %s1710_s2 }
 0x1bf   : > { %s1712_s25 = scalar_lea.vmem %s1711_s2, 64  ;;  %p1713_p9 = scmp.lt.s32.totalorder %s3022_s18, %s1711_s2 }
 0x1c0   : > { %p1708_p6 = pnand %p1707_p5, %p1938_p4  ;;  %p1714_p12 = scmp.lt.s32.totalorder %s1712_s25, %s1706_s24 }
 0x1c2   : > { %p1709_p7 = pneg %p1708_p6  ;;  %p1715_p2 = por %p1714_p12, %p1713_p9 }
 0x1c4   : > { %p1716_p10 = pnand %p1715_p2, %p1709_p7 }
 0x1c6   : > { %1719 = shalt.err (!%p1716_p10)
}
 0x1c7   : > { %s1720_s12 = scalar_lea.hbm %s3020_s26, 32  ;;  %s1724_s0 = scalar_lea.hbm %s3148_s5, 96 }
 0x1c8   : > { %p1721_p11 = scmp.ne.s32.totalorder %s3020_s26, %s1720_s12  ;;  %p1725_p1 = scmp.lt.s32.totalorder %s3020_s26, %s3148_s5 }
 0x1c9   : > { %p1726_p3 = scmp.lt.s32.totalorder %s1724_s0, %s1720_s12 }
 0x1ca   : > { %p1722_p13 = pnand %p1721_p11, %p1938_p4 }
 0x1cb   : > { %p1727_p5 = por %p1726_p3, %p1725_p1 }
 0x1cc   : > { %p1723_p0 = pneg %p1722_p13 }
 0x1ce   : > { %p1728_p6 = pnand %p1727_p5, %p1723_p0 }
 0x1d0   : > { %1731 = shalt.err (!%p1728_p6)
}
 0x1d1   : > { %1557 = dma.vmem_to_hbm [thread:$0]  (%p1938_p4), %s3022_s18, 32, %s3020_s26, %s3047_s10  }
 0x1d2   : > { %s1732_s14 = scalar_lea.vmem %s3029_s28, 32  ;;  %s1854_s22 = smov [#allocation9]  }
 0x1d3   : > { %p1733_p7 = scmp.ne.s32.totalorder %s3029_s28, %s1732_s14  ;;  %s1736_s17 = sshll.u32 %s1854_s22, 4  ;;  %s1737_s17 = int_to_ptr.vmem [resolvable:$false] %s1736_s17 }
 0x1d4   : > { %s1738_s19 = scalar_lea.vmem %s1737_s17, 64  ;;  %p1739_p2 = scmp.lt.s32.totalorder %s3029_s28, %s1737_s17 }
 0x1d5   : > { %p1734_p9 = pnand %p1733_p7, %p1938_p4  ;;  %p1740_p10 = scmp.lt.s32.totalorder %s1738_s19, %s1732_s14 }
 0x1d7   : > { %p1735_p12 = pneg %p1734_p9  ;;  %p1741_p11 = por %p1740_p10, %p1739_p2 }
 0x1d9   : > { %p1742_p13 = pnand %p1741_p11, %p1735_p12 }
 0x1db   : > { %1745 = shalt.err (!%p1742_p13)
}
 0x1dc   : > { %s1746_s23 = scalar_lea.hbm %s3027_s9, 32  ;;  %s1750_s24 = scalar_lea.hbm %s3149_s6, 96 }
 0x1dd   : > { %p1747_p0 = scmp.ne.s32.totalorder %s3027_s9, %s1746_s23  ;;  %p1751_p5 = scmp.lt.s32.totalorder %s3027_s9, %s3149_s6 }
 0x1de   : > { %p1752_p6 = scmp.lt.s32.totalorder %s1750_s24, %s1746_s23 }
 0x1df   : > { %p1748_p1 = pnand %p1747_p0, %p1938_p4 }
 0x1e0   : > { %p1753_p7 = por %p1752_p6, %p1751_p5 }
 0x1e1   : > { %p1749_p3 = pneg %p1748_p1 }
 0x1e3   : > { %p1754_p9 = pnand %p1753_p7, %p1749_p3 }
 0x1e5   : > { %1757 = shalt.err (!%p1754_p9)
}
 0x1e6   : > { %1558 = dma.vmem_to_hbm [thread:$0]  (%p1938_p4), %s3029_s28, 32, %s3027_s9, %s3047_s10  }
 0x1e7   : > { %s1758_s25 = scalar_lea.vmem %s3036_s13, 32  ;;  %s1855_s12 = smov [#allocation10]  }
 0x1e8   : > { %p1759_p12 = scmp.ne.s32.totalorder %s3036_s13, %s1758_s25  ;;  %s1762_s20 = sshll.u32 %s1855_s12, 4  ;;  %s1763_s20 = int_to_ptr.vmem [resolvable:$false] %s1762_s20 }
 0x1e9   : > { %s1764_s21 = scalar_lea.vmem %s1763_s20, 64  ;;  %p1765_p11 = scmp.lt.s32.totalorder %s3036_s13, %s1763_s20 }
 0x1ea   : > { %p1760_p2 = pnand %p1759_p12, %p1938_p4  ;;  %p1766_p13 = scmp.lt.s32.totalorder %s1764_s21, %s1758_s25 }
 0x1ec   : > { %p1761_p10 = pneg %p1760_p2  ;;  %p1767_p0 = por %p1766_p13, %p1765_p11 }
 0x1ee   : > { %p1768_p1 = pnand %p1767_p0, %p1761_p10 }
 0x1f0   : > { %1771 = shalt.err (!%p1768_p1)
}
 0x1f1   : > { %s1772_s0 = scalar_lea.hbm %s3034_s15, 32  ;;  %s1776_s27 = scalar_lea.hbm %s3150_s7, 96 }
 0x1f2   : > { %p1773_p3 = scmp.ne.s32.totalorder %s3034_s15, %s1772_s0  ;;  %p1777_p7 = scmp.lt.s32.totalorder %s3034_s15, %s3150_s7 }
 0x1f3   : > { %p1778_p9 = scmp.lt.s32.totalorder %s1776_s27, %s1772_s0 }
 0x1f4   : > { %p1774_p5 = pnand %p1773_p3, %p1938_p4 }
 0x1f5   : > { %p1779_p12 = por %p1778_p9, %p1777_p7 }
 0x1f6   : > { %p1775_p6 = pneg %p1774_p5 }
 0x1f8   : > { %p1780_p2 = pnand %p1779_p12, %p1775_p6 }
 0x1fa   : > { %1783 = shalt.err (!%p1780_p2)
}
 0x1fb   : > { %1559 = dma.vmem_to_hbm [thread:$0]  (%p1938_p4), %s3036_s13, 32, %s3034_s15, %s3047_s10  }
 0x1fc   : > { %p3187_p10 = scmp.eq.s32.totalorder %s1925_s30, 2 }
 0x1fe   : > { %1813 = dma.done.wait (%p3187_p10), [#allocation3], 256   ;;  %p3188_p11 = pmov %p3187_p10 }
 0x1ff   : > { %p3189_p13 = pmov %p3187_p10 }
 0x200   : > { %1815 = vsyncadd (%p3188_p11), [#allocation3], 4294967040 }
 0x201   : > { %1817 = dma.done.wait (%p3189_p13), [#allocation7], 32   ;;  %p3190_p0 = pmov %p3187_p10 }
 0x203   : > { %1819 = vsyncadd (%p3190_p0), [#allocation7], 4294967264 }
 0x204 PF: > { %p1587_p1 = scmp.ge.s32.totalorder %s1846_s29, 2  ;;  %s3192_s22 = sadd.s32 4294967294, %s1846_s29  }
 0x205   : > { %s1332_s17 = sand.u32 1, %s3192_s22  }
 0x206   : > { %p1572_p4 = pnand %p1587_p1, %p1947_p8  ;;  %s1333_s13 = scalar_lea.sflag [#allocation3], %s1332_s17 }
 0x208   : > { %p1573_p3 = pneg %p1572_p4 }
 0x20a   : > { %1821 = dma.done.wait (%p1573_p3), %s1333_s13, 96  }
 0x20b   : > { %1823 = vsyncadd (%p1573_p3), %s1333_s13, 4294967200  ;;  %s21_s29 = sadd.s32 1, %s1846_s29   ;;  %s3193_s24 = sld [smem:[#allocation15_spill]] }
 0x20c   : > { %p18_p5 = scmp.ge.s32.totalorder %s21_s29, 5   ;;  %s3194_s25 = sld [smem:[#allocation16_spill]] }
 0x20d   : > { %s3195_s26 = sld [smem:[#allocation20_spill]] }
 0x20e   : > { %s3196_s27 = sld [smem:[#allocation17_spill]]  ;;  %20 = sbr.rel (!%p18_p5) target bundleno = 8 (0x8), region = 132 }
 0x20f   : > { %s3197_s28 = sld [smem:[#allocation18_spill]] }
 0x213   :  { %1356 = vsyncpa [#allocation3], 1 }
 0x214   :  { %1358 = vsyncpa [#allocation3 + $0x1], 1 }
 0x215   :  { %1359 = vsyncpa [#allocation7], 1 }
 0x216   :  { %1360 = vsyncpa [#allocation4], 1 }
 0x217   :  { %1362 = vsyncpa [#allocation4 + $0x1], 1 }

</bundles_post_ra>
